<compile_context>
chip_gen: v7x
topology: tpu7x:2x2x1
jax: 0.10.0
libtpu: 0.0.40
codegen_flags: <defaults>
</compile_context>

<pallas_src>
import functools
import math

import jax
import jax.numpy as jnp
from jax import lax
from jax.experimental import pallas as pl
from jax.experimental.pallas import tpu as pltpu


def _round_up(x, m):
    return (x + m - 1) // m * m


def _pad_gate_weight(w, in_pad, h_pad):
    """(in_dim, 3H) weight with gate blocks [r|z|n] -> (in_pad, 3*h_pad)."""
    in_dim, three_h = w.shape
    h = three_h // 3
    blocks = [
        jnp.pad(w[:, g * h:(g + 1) * h], ((0, in_pad - in_dim), (0, h_pad - h)))
        for g in range(3)
    ]
    return jnp.concatenate(blocks, axis=1)


def _pad_gate_bias(b, h_pad):
    """(1, 3H) bias with gate blocks [r|z|n] -> (1, 3*h_pad)."""
    h = b.shape[1] // 3
    blocks = [
        jnp.pad(b[:, g * h:(g + 1) * h], ((0, 0), (0, h_pad - h)))
        for g in range(3)
    ]
    return jnp.concatenate(blocks, axis=1)


def gru_kernel(x_ref, wx_ref, bx_ref, wh_ref, bh_ref, wf_ref, bf_ref,
               out_ref, gx_ref, h_ref, *, seq_len, t_chunk, b_blk, h_pad,
               unroll, mask_tail):
    """One grid step == one (batch block, time chunk).

    x_ref : (t_chunk*b_blk, D_pad)   rows [t*b_blk:(t+1)*b_blk] = local step t.
    gx_ref: (t_chunk*b_blk, 3*H_pad) VMEM scratch, hoisted x-projection (f32).
    h_ref : (b_blk, H_pad)           persistent hidden state across chunks.
    """
    tc = pl.program_id(1)
    n_tc = pl.num_programs(1)

    # New batch block: reset hidden state.
    @pl.when(tc == 0)
    def _():
        h_ref[...] = jnp.zeros_like(h_ref)

    # ---- Phase 1: hoisted input projection for this chunk (one MXU matmul) --
    gx_ref[...] = (
        jnp.dot(x_ref[...], wx_ref[...], preferred_element_type=jnp.float32)
        + bx_ref[...]).astype(gx_ref.dtype)

    # Grid-invariant weights: constant index maps -> DMA'd once.
    wh = wh_ref[...]
    # Hoisted bias broadcast (not CSE'd if left inside the unrolled loop).
    bh_b = jnp.broadcast_to(bh_ref[...], (b_blk, 3 * h_pad))

    # ---- Phase 2: sequential GRU recurrence (hidden state = vreg carry) -----
    def step(t, h):
        row = pl.multiple_of(t * b_blk, b_blk)           # sublane-aligned start
        gx = gx_ref[pl.ds(row, b_blk), :]                # (b_blk, 3*H_pad)
        gh = jnp.dot(h.astype(wh.dtype), wh,
                     preferred_element_type=jnp.float32) + bh_b
        # Lane-aligned static slices (h_pad is a multiple of 128).
        i_r, i_z, i_n = (gx[:, :h_pad], gx[:, h_pad:2 * h_pad],
                         gx[:, 2 * h_pad:])
        h_r, h_z, h_n = (gh[:, :h_pad], gh[:, h_pad:2 * h_pad],
                         gh[:, 2 * h_pad:])
        r = jax.nn.sigmoid(i_r + h_r)                    # EUP
        z = jax.nn.sigmoid(i_z + h_z)                    # EUP
        new = jnp.tanh(i_n + r * h_n)                    # EUP
        h_new = new + z * (h - new)                      # VPU
        if mask_tail:
            # Padded tail steps (t >= seq_len) are no-ops: keep the old h.
            valid = (tc * t_chunk + t) < seq_len
            h_new = jnp.where(valid, h_new, h)
        return h_new

    h_last = lax.fori_loop(0, t_chunk, step, h_ref[...], unroll=unroll)
    h_ref[...] = h_last                                  # persist across chunks

    # ---- Phase 3: fc head on the final hidden state (last chunk only) -------
    @pl.when(tc == n_tc - 1)
    def _():
        wf = wf_ref[...]
        out_ref[...] = (
            jnp.dot(h_last.astype(wf.dtype), wf,
                    preferred_element_type=jnp.float32) + bf_ref[...]
        ).astype(out_ref.dtype)


def gru_model_forward(x, wx, bx, wh, bh, wf, bf, *, b_blk=None, t_chunk=None,
                      weight_dtype=jnp.float32):
    """Pallas implementation of GRUModel.forward.

    x:  (B, T, D) float32
    wx: (D, 3H)  bx: (1, 3H)    -- x2h weight, pre-transposed to (in, out)
    wh: (H, 3H)  bh: (1, 3H)    -- h2h
    wf: (H, O)   bf: (1, O)     -- fc
    weight_dtype: jnp.bfloat16 recommended for the MXU operands on all gens
                  (f32 accumulation and f32 gate math are kept); f32 for
                  bit-tight numerics.
    returns (B, O) float32
    """
    B, T, D = x.shape
    H = wh.shape[0]
    O = wf.shape[1]

    D_pad = _round_up(D, 128)
    H_pad = _round_up(H, 128)
    O_pad = _round_up(O, 128)

    # Batch tile: as large as the batch allows, capped at 128 (full MXU M).
    if b_blk is None:
        b_blk = min(128, _round_up(B, 8))
    b_blk = _round_up(b_blk, 8)
    B_pad = _round_up(B, b_blk)
    nb = B_pad // b_blk

    # Time chunk: bound the gate_x slab to ~2048 rows regardless of T.
    if t_chunk is None:
        t_chunk = min(T, max(8, 2048 // b_blk))
    t_chunk = max(1, min(t_chunk, T))
    T_pad = _round_up(T, t_chunk)
    n_tc = T_pad // t_chunk
    mask_tail = (T_pad != T)
    # Full unroll only for short chunks; partial otherwise (code-size/spills).
    unroll = True if t_chunk <= 16 else 4

    # ---- Host-side (XLA) layout plumbing: pad + re-block x ------------------
    x_p = jnp.pad(x.astype(weight_dtype),
                  ((0, B_pad - B), (0, T_pad - T), (0, D_pad - D)))
    # (B_pad, T_pad, D_pad) -> (nb, T_pad*b_blk, D_pad); row t*b_blk+i of block
    # b is x[b*b_blk + i, t, :] (contiguous, sublane-aligned per-step rows).
    x_blk = (x_p.reshape(nb, b_blk, T_pad, D_pad)
                 .transpose(0, 2, 1, 3)
                 .reshape(nb, T_pad * b_blk, D_pad))

    wx_p = _pad_gate_weight(wx, D_pad, H_pad).astype(weight_dtype)
    wh_p = _pad_gate_weight(wh, H_pad, H_pad).astype(weight_dtype)
    bx_p = _pad_gate_bias(bx, H_pad)                      # biases stay f32
    bh_p = _pad_gate_bias(bh, H_pad)
    wf_p = jnp.pad(wf, ((0, H_pad - H), (0, O_pad - O))).astype(weight_dtype)
    bf_p = jnp.pad(bf, ((0, 0), (0, O_pad - O)))

    # ---- VMEM budget derived from the actual tiles (safe on v7x's 64 MiB) ---
    w_isz = jnp.dtype(weight_dtype).itemsize
    vmem_need = (
        2 * t_chunk * b_blk * D_pad * w_isz               # x chunk (2 buffers)
        + t_chunk * b_blk * 3 * H_pad * 4                 # gate_x scratch (f32)
        + b_blk * H_pad * 4                               # persistent h scratch
        + (D_pad + H_pad) * 3 * H_pad * w_isz             # Wx, Wh
        + H_pad * O_pad * w_isz                           # Wfc
        + (2 * 3 * H_pad + O_pad) * 4                     # biases
        + 2 * b_blk * O_pad * 4                           # out (2 buffers)
    )
    vmem_limit = int(min(max(2 * vmem_need, 32 * 1024 * 1024),
                         48 * 1024 * 1024))

    kernel = functools.partial(
        gru_kernel, seq_len=T, t_chunk=t_chunk, b_blk=b_blk, h_pad=H_pad,
        unroll=unroll, mask_tail=mask_tail)

    out_p = pl.pallas_call(
        kernel,
        out_shape=jax.ShapeDtypeStruct((B_pad, O_pad), jnp.float32),
        grid_spec=pltpu.PrefetchScalarGridSpec(
            num_scalar_prefetch=0,
            grid=(nb, n_tc),                               # batch blocks x chunks
            in_specs=[
                # x: batch-block dim squeezed, chunk of t_chunk*b_blk rows.
                pl.BlockSpec((None, t_chunk * b_blk, D_pad),
                             lambda b, t: (b, t, 0)),
                # Weights/biases: constant index maps -> fetched once.
                pl.BlockSpec((D_pad, 3 * H_pad), lambda b, t: (0, 0)),   # Wx
                pl.BlockSpec((1, 3 * H_pad), lambda b, t: (0, 0)),       # bx
                pl.BlockSpec((H_pad, 3 * H_pad), lambda b, t: (0, 0)),   # Wh
                pl.BlockSpec((1, 3 * H_pad), lambda b, t: (0, 0)),       # bh
                pl.BlockSpec((H_pad, O_pad), lambda b, t: (0, 0)),       # Wfc
                pl.BlockSpec((1, O_pad), lambda b, t: (0, 0)),           # bfc
            ],
            # Output block constant across the time-chunk axis (written once,
            # at the last chunk -> single HBM writeback per batch block).
            out_specs=pl.BlockSpec((b_blk, O_pad), lambda b, t: (b, 0)),
            scratch_shapes=[
                pltpu.VMEM((t_chunk * b_blk, 3 * H_pad), jnp.float32),   # gate_x
                pltpu.VMEM((b_blk, H_pad), jnp.float32),                 # h carry
            ],
        ),
        compiler_params=pltpu.CompilerParams(
            # Batch blocks independent (v7x megacore); time chunks sequential.
            dimension_semantics=("parallel", "arbitrary"),
            vmem_limit_bytes=vmem_limit,
        ),
    )(x_blk, wx_p, bx_p, wh_p, bh_p, wf_p, bf_p)

    return out_p[:B, :O]


def gru_model_ref(x, wx, bx, wh, bh, wf, bf):
    """Plain-JAX reference matching the PyTorch forward semantics."""
    B, T, D = x.shape
    H = wh.shape[0]
    h = jnp.zeros((B, H), jnp.float32)
    for t in range(T):
        gate_x = x[:, t, :] @ wx + bx
        gate_h = h @ wh + bh
        i_r, i_z, i_n = jnp.split(gate_x, 3, axis=1)
        h_r, h_z, h_n = jnp.split(gate_h, 3, axis=1)
        r = jax.nn.sigmoid(i_r + h_r)
        z = jax.nn.sigmoid(i_z + h_z)
        new = jnp.tanh(i_n + r * h_n)
        h = new + z * (h - new)
    return h @ wf + bf


def _make_params(key, B, T, D, H, O):
    ks = jax.random.split(key, 7)
    std = 1.0 / math.sqrt(H)
    x = jax.random.normal(ks[0], (B, T, D), dtype=jnp.float32)
    # Synthetic parameters (shapes per nn.Linear in the module), stored
    # pre-transposed as (in, out) for the kernel; gate order [r | z | n].
    wx = jax.random.uniform(ks[1], (D, 3 * H), minval=-std, maxval=std, dtype=jnp.float32)
    bx = jax.random.uniform(ks[2], (1, 3 * H), minval=-std, maxval=std, dtype=jnp.float32)
    wh = jax.random.uniform(ks[3], (H, 3 * H), minval=-std, maxval=std, dtype=jnp.float32)
    bh = jax.random.uniform(ks[4], (1, 3 * H), minval=-std, maxval=std, dtype=jnp.float32)
    wf = jax.random.uniform(ks[5], (H, O), minval=-std, maxval=std, dtype=jnp.float32)
    bf = jax.random.uniform(ks[6], (1, O), minval=-std, maxval=std, dtype=jnp.float32)
    return x, wx, bx, wh, bh, wf, bf


def _run_case(key, B, T, D, H, O, *, weight_dtype, atol, rtol,
              b_blk=None, t_chunk=None):
    x, wx, bx, wh, bh, wf, bf = _make_params(key, B, T, D, H, O)
    out = gru_model_forward(x, wx, bx, wh, bh, wf, bf,
                            b_blk=b_blk, t_chunk=t_chunk,
                            weight_dtype=weight_dtype)
    out = jax.block_until_ready(out)
    ref = gru_model_ref(x, wx, bx, wh, bh, wf, bf)
    assert out.shape == (B, O), out.shape
    assert jnp.allclose(out, ref, atol=atol, rtol=rtol), (
        f"max abs err {jnp.max(jnp.abs(out - ref))}")
    return out


if __name__ == "__main__":
    # Small shapes consistent with GRUModel(inout_dim, hidden_dim, layer_dim,
    # output_dim).  The module as written requires inout_dim == hidden_dim.
    D, H, O = 32, 32, 16
    key = jax.random.PRNGKey(0)
    k1, k2, k3 = jax.random.split(key, 3)

    # 1) f32 path, single time chunk: bit-tight check.
    _run_case(k1, B=2, T=8, D=D, H=H, O=O,
              weight_dtype=jnp.float32, atol=1e-5, rtol=1e-5)

    # 2) f32 path, multiple time chunks with a ragged tail (T=10, t_chunk=4)
    #    and a padded batch (B=5 -> 8): exercises the persistent-h / masking
    #    path, still bit-tight.
    _run_case(k2, B=5, T=10, D=D, H=H, O=O, t_chunk=4,
              weight_dtype=jnp.float32, atol=1e-5, rtol=1e-5)

    # 3) bf16 MXU-operand path (recommended default for throughput on
    #    v5e/v6e/v7x): gate math stays f32, so only per-step bf16 rounding of
    #    h / gate_x inputs -> looser tolerance.
    _run_case(k3, B=2, T=8, D=D, H=H, O=O,
              weight_dtype=jnp.bfloat16, atol=5e-2, rtol=5e-2)

    print("KERNEL_OK")
</pallas_src>

<mosaic_0001>
module attributes {stable_mosaic.version = 11 : i64} {
  func.func @gru_kernel(%arg0: i32, %arg1: i32, %arg2: memref<1x64x128xf32, #tpu.memory_space<vmem>>, %arg3: memref<128x384xf32, #tpu.memory_space<vmem>>, %arg4: memref<1x384xf32, #tpu.memory_space<vmem>>, %arg5: memref<128x384xf32, #tpu.memory_space<vmem>>, %arg6: memref<1x384xf32, #tpu.memory_space<vmem>>, %arg7: memref<128x128xf32, #tpu.memory_space<vmem>>, %arg8: memref<1x128xf32, #tpu.memory_space<vmem>>, %arg9: memref<8x128xf32, #tpu.memory_space<vmem>>, %arg10: memref<64x384xf32, #tpu.memory_space<vmem>>, %arg11: memref<8x128xf32, #tpu.memory_space<vmem>>) attributes {dimension_semantics = [#tpu.dimension_semantics<parallel>, #tpu.dimension_semantics<arbitrary>], iteration_bounds = array<i64: 1, 1>, scalar_prefetch = 0 : i64, scratch_operands = 2 : i64, tpu.core_type = #tpu.core_type<tc>, window_params = [{transform_indices = @transform_0, window_bounds = array<i64: 1, 64, 128>}, {pipeline_mode = #tpu.pipeline_mode<synchronous>, transform_indices = @transform_1, window_bounds = array<i64: 128, 384>}, {pipeline_mode = #tpu.pipeline_mode<synchronous>, transform_indices = @transform_2, window_bounds = array<i64: 1, 384>}, {pipeline_mode = #tpu.pipeline_mode<synchronous>, transform_indices = @transform_3, window_bounds = array<i64: 128, 384>}, {pipeline_mode = #tpu.pipeline_mode<synchronous>, transform_indices = @transform_4, window_bounds = array<i64: 1, 384>}, {pipeline_mode = #tpu.pipeline_mode<synchronous>, transform_indices = @transform_5, window_bounds = array<i64: 128, 128>}, {pipeline_mode = #tpu.pipeline_mode<synchronous>, transform_indices = @transform_6, window_bounds = array<i64: 1, 128>}, {transform_indices = @transform_7, window_bounds = array<i64: 8, 128>}]} {
    %c0_i32 = arith.constant 0 : i32
    %0 = arith.cmpi eq, %arg1, %c0_i32 : i32
    %1 = arith.extui %0 : i1 to i32
    %c0_i32_0 = arith.constant 0 : i32
    %2 = arith.cmpi ne, %1, %c0_i32_0 : i32
    scf.if %2 {
      %cst_60 = arith.constant 0.000000e+00 : f32
      %260 = vector.broadcast %cst_60 : f32 to vector<8x128xf32>
      %c0_61 = arith.constant 0 : index
      %c0_62 = arith.constant 0 : index
      %261 = vector.load %arg11[%c0_61, %c0_62] : memref<8x128xf32, #tpu.memory_space<vmem>>, vector<8x128xf32>
      tpu.vector_store %arg11[%c0_61, %c0_62], %260 {strides = array<i32>} : memref<8x128xf32, #tpu.memory_space<vmem>>, vector<8x128xf32>,
    } else {
    }
    %c0 = arith.constant 0 : index
    %c0_1 = arith.constant 0 : index
    %c0_2 = arith.constant 0 : index
    %3 = vector.load %arg2[%c0, %c0_1, %c0_2] : memref<1x64x128xf32, #tpu.memory_space<vmem>>, vector<1x64x128xf32>
    %4 = vector.shape_cast %3 : vector<1x64x128xf32> to vector<64x128xf32>
    %c0_3 = arith.constant 0 : index
    %c0_4 = arith.constant 0 : index
    %5 = vector.load %arg3[%c0_3, %c0_4] : memref<128x384xf32, #tpu.memory_space<vmem>>, vector<128x384xf32>
    %cst = arith.constant dense<0.000000e+00> : vector<64x384xf32>
    %6 = tpu.matmul %4, %5, %cst {dimension_numbers = #tpu.dot_dimension_numbers<[1], [0], [0], [1], [0, 0, 1, 1], [], []>} : vector<64x128xf32>, vector<128x384xf32>, vector<64x384xf32> -> vector<64x384xf32>
    %c0_5 = arith.constant 0 : index
    %c0_6 = arith.constant 0 : index
    %7 = vector.load %arg4[%c0_5, %c0_6] : memref<1x384xf32, #tpu.memory_space<vmem>>, vector<1x384xf32>
    %8 = vector.broadcast %7 : vector<1x384xf32> to vector<64x384xf32>
    %9 = arith.addf %6, %8 : vector<64x384xf32>
    %c0_7 = arith.constant 0 : index
    %c0_8 = arith.constant 0 : index
    %10 = vector.load %arg10[%c0_7, %c0_8] : memref<64x384xf32, #tpu.memory_space<vmem>>, vector<64x384xf32>
    tpu.vector_store %arg10[%c0_7, %c0_8], %9 {strides = array<i32>} : memref<64x384xf32, #tpu.memory_space<vmem>>, vector<64x384xf32>,
    %c0_9 = arith.constant 0 : index
    %c0_10 = arith.constant 0 : index
    %11 = vector.load %arg5[%c0_9, %c0_10] : memref<128x384xf32, #tpu.memory_space<vmem>>, vector<128x384xf32>
    %c0_11 = arith.constant 0 : index
    %c0_12 = arith.constant 0 : index
    %12 = vector.load %arg6[%c0_11, %c0_12] : memref<1x384xf32, #tpu.memory_space<vmem>>, vector<1x384xf32>
    %13 = vector.shape_cast %12 : vector<1x384xf32> to vector<1x384xf32>
    %14 = vector.broadcast %13 : vector<1x384xf32> to vector<8x384xf32>
    %c0_13 = arith.constant 0 : index
    %c0_14 = arith.constant 0 : index
    %15 = vector.load %arg11[%c0_13, %c0_14] : memref<8x128xf32, #tpu.memory_space<vmem>>, vector<8x128xf32>
    %c0_i32_15 = arith.constant 0 : i32
    %c8_i32 = arith.constant 8 : i32
    %16 = arith.muli %c0_i32_15, %c8_i32 : i32
    %17 = tpu.assume_multiple %16, 8 : i32
    %18 = arith.index_cast %17 : i32 to index
    %c0_16 = arith.constant 0 : index
    %19 = vector.load %arg10[%18, %c0_16] : memref<64x384xf32, #tpu.memory_space<vmem>>, vector<8x384xf32>
    %cst_17 = arith.constant dense<0.000000e+00> : vector<8x384xf32>
    %20 = tpu.matmul %15, %11, %cst_17 {dimension_numbers = #tpu.dot_dimension_numbers<[1], [0], [0], [1], [0, 0, 1, 1], [], []>} : vector<8x128xf32>, vector<128x384xf32>, vector<8x384xf32> -> vector<8x384xf32>
    %21 = arith.addf %20, %14 : vector<8x384xf32>
    %22 = vector.extract_strided_slice %19 {offsets = [0, 0], sizes = [8, 128], strides = [1, 1]} : vector<8x384xf32> to vector<8x128xf32>
    %23 = vector.extract_strided_slice %19 {offsets = [0, 128], sizes = [8, 128], strides = [1, 1]} : vector<8x384xf32> to vector<8x128xf32>
    %24 = vector.extract_strided_slice %19 {offsets = [0, 256], sizes = [8, 128], strides = [1, 1]} : vector<8x384xf32> to vector<8x128xf32>
    %25 = vector.extract_strided_slice %21 {offsets = [0, 0], sizes = [8, 128], strides = [1, 1]} : vector<8x384xf32> to vector<8x128xf32>
    %26 = vector.extract_strided_slice %21 {offsets = [0, 128], sizes = [8, 128], strides = [1, 1]} : vector<8x384xf32> to vector<8x128xf32>
    %27 = vector.extract_strided_slice %21 {offsets = [0, 256], sizes = [8, 128], strides = [1, 1]} : vector<8x384xf32> to vector<8x128xf32>
    %28 = arith.addf %22, %25 : vector<8x128xf32>
    %29 = arith.negf %28 : vector<8x128xf32>
    %30 = math.exp %29 : vector<8x128xf32>
    %cst_18 = arith.constant 1.000000e+00 : f32
    %31 = vector.broadcast %cst_18 : f32 to vector<8x128xf32>
    %32 = arith.addf %31, %30 : vector<8x128xf32>
    %33 = arith.divf %31, %32 : vector<8x128xf32>
    %34 = arith.addf %23, %26 : vector<8x128xf32>
    %35 = arith.negf %34 : vector<8x128xf32>
    %36 = math.exp %35 : vector<8x128xf32>
    %cst_19 = arith.constant 1.000000e+00 : f32
    %37 = vector.broadcast %cst_19 : f32 to vector<8x128xf32>
    %38 = arith.addf %37, %36 : vector<8x128xf32>
    %39 = arith.divf %37, %38 : vector<8x128xf32>
    %40 = arith.mulf %33, %27 : vector<8x128xf32>
    %41 = arith.addf %24, %40 : vector<8x128xf32>
    %42 = math.tanh %41 : vector<8x128xf32>
    %43 = arith.subf %15, %42 : vector<8x128xf32>
    %44 = arith.mulf %39, %43 : vector<8x128xf32>
    %45 = arith.addf %42, %44 : vector<8x128xf32>
    %c1_i32 = arith.constant 1 : i32
    %c8_i32_20 = arith.constant 8 : i32
    %46 = arith.muli %c1_i32, %c8_i32_20 : i32
    %47 = tpu.assume_multiple %46, 8 : i32
    %48 = arith.index_cast %47 : i32 to index
    %c0_21 = arith.constant 0 : index
    %49 = vector.load %arg10[%48, %c0_21] : memref<64x384xf32, #tpu.memory_space<vmem>>, vector<8x384xf32>
    %cst_22 = arith.constant dense<0.000000e+00> : vector<8x384xf32>
    %50 = tpu.matmul %45, %11, %cst_22 {dimension_numbers = #tpu.dot_dimension_numbers<[1], [0], [0], [1], [0, 0, 1, 1], [], []>} : vector<8x128xf32>, vector<128x384xf32>, vector<8x384xf32> -> vector<8x384xf32>
    %51 = arith.addf %50, %14 : vector<8x384xf32>
    %52 = vector.extract_strided_slice %49 {offsets = [0, 0], sizes = [8, 128], strides = [1, 1]} : vector<8x384xf32> to vector<8x128xf32>
    %53 = vector.extract_strided_slice %49 {offsets = [0, 128], sizes = [8, 128], strides = [1, 1]} : vector<8x384xf32> to vector<8x128xf32>
    %54 = vector.extract_strided_slice %49 {offsets = [0, 256], sizes = [8, 128], strides = [1, 1]} : vector<8x384xf32> to vector<8x128xf32>
    %55 = vector.extract_strided_slice %51 {offsets = [0, 0], sizes = [8, 128], strides = [1, 1]} : vector<8x384xf32> to vector<8x128xf32>
    %56 = vector.extract_strided_slice %51 {offsets = [0, 128], sizes = [8, 128], strides = [1, 1]} : vector<8x384xf32> to vector<8x128xf32>
    %57 = vector.extract_strided_slice %51 {offsets = [0, 256], sizes = [8, 128], strides = [1, 1]} : vector<8x384xf32> to vector<8x128xf32>
    %58 = arith.addf %52, %55 : vector<8x128xf32>
    %59 = arith.negf %58 : vector<8x128xf32>
    %60 = math.exp %59 : vector<8x128xf32>
    %cst_23 = arith.constant 1.000000e+00 : f32
    %61 = vector.broadcast %cst_23 : f32 to vector<8x128xf32>
    %62 = arith.addf %61, %60 : vector<8x128xf32>
    %63 = arith.divf %61, %62 : vector<8x128xf32>
    %64 = arith.addf %53, %56 : vector<8x128xf32>
    %65 = arith.negf %64 : vector<8x128xf32>
    %66 = math.exp %65 : vector<8x128xf32>
    %cst_24 = arith.constant 1.000000e+00 : f32
    %67 = vector.broadcast %cst_24 : f32 to vector<8x128xf32>
    %68 = arith.addf %67, %66 : vector<8x128xf32>
    %69 = arith.divf %67, %68 : vector<8x128xf32>
    %70 = arith.mulf %63, %57 : vector<8x128xf32>
    %71 = arith.addf %54, %70 : vector<8x128xf32>
    %72 = math.tanh %71 : vector<8x128xf32>
    %73 = arith.subf %45, %72 : vector<8x128xf32>
    %74 = arith.mulf %69, %73 : vector<8x128xf32>
    %75 = arith.addf %72, %74 : vector<8x128xf32>
    %c2_i32 = arith.constant 2 : i32
    %c8_i32_25 = arith.constant 8 : i32
    %76 = arith.muli %c2_i32, %c8_i32_25 : i32
    %77 = tpu.assume_multiple %76, 8 : i32
    %78 = arith.index_cast %77 : i32 to index
    %c0_26 = arith.constant 0 : index
    %79 = vector.load %arg10[%78, %c0_26] : memref<64x384xf32, #tpu.memory_space<vmem>>, vector<8x384xf32>
    %cst_27 = arith.constant dense<0.000000e+00> : vector<8x384xf32>
    %80 = tpu.matmul %75, %11, %cst_27 {dimension_numbers = #tpu.dot_dimension_numbers<[1], [0], [0], [1], [0, 0, 1, 1], [], []>} : vector<8x128xf32>, vector<128x384xf32>, vector<8x384xf32> -> vector<8x384xf32>
    %81 = arith.addf %80, %14 : vector<8x384xf32>
    %82 = vector.extract_strided_slice %79 {offsets = [0, 0], sizes = [8, 128], strides = [1, 1]} : vector<8x384xf32> to vector<8x128xf32>
    %83 = vector.extract_strided_slice %79 {offsets = [0, 128], sizes = [8, 128], strides = [1, 1]} : vector<8x384xf32> to vector<8x128xf32>
    %84 = vector.extract_strided_slice %79 {offsets = [0, 256], sizes = [8, 128], strides = [1, 1]} : vector<8x384xf32> to vector<8x128xf32>
    %85 = vector.extract_strided_slice %81 {offsets = [0, 0], sizes = [8, 128], strides = [1, 1]} : vector<8x384xf32> to vector<8x128xf32>
    %86 = vector.extract_strided_slice %81 {offsets = [0, 128], sizes = [8, 128], strides = [1, 1]} : vector<8x384xf32> to vector<8x128xf32>
    %87 = vector.extract_strided_slice %81 {offsets = [0, 256], sizes = [8, 128], strides = [1, 1]} : vector<8x384xf32> to vector<8x128xf32>
    %88 = arith.addf %82, %85 : vector<8x128xf32>
    %89 = arith.negf %88 : vector<8x128xf32>
    %90 = math.exp %89 : vector<8x128xf32>
    %cst_28 = arith.constant 1.000000e+00 : f32
    %91 = vector.broadcast %cst_28 : f32 to vector<8x128xf32>
    %92 = arith.addf %91, %90 : vector<8x128xf32>
    %93 = arith.divf %91, %92 : vector<8x128xf32>
    %94 = arith.addf %83, %86 : vector<8x128xf32>
    %95 = arith.negf %94 : vector<8x128xf32>
    %96 = math.exp %95 : vector<8x128xf32>
    %cst_29 = arith.constant 1.000000e+00 : f32
    %97 = vector.broadcast %cst_29 : f32 to vector<8x128xf32>
    %98 = arith.addf %97, %96 : vector<8x128xf32>
    %99 = arith.divf %97, %98 : vector<8x128xf32>
    %100 = arith.mulf %93, %87 : vector<8x128xf32>
    %101 = arith.addf %84, %100 : vector<8x128xf32>
    %102 = math.tanh %101 : vector<8x128xf32>
    %103 = arith.subf %75, %102 : vector<8x128xf32>
    %104 = arith.mulf %99, %103 : vector<8x128xf32>
    %105 = arith.addf %102, %104 : vector<8x128xf32>
    %c3_i32 = arith.constant 3 : i32
    %c8_i32_30 = arith.constant 8 : i32
    %106 = arith.muli %c3_i32, %c8_i32_30 : i32
    %107 = tpu.assume_multiple %106, 8 : i32
    %108 = arith.index_cast %107 : i32 to index
    %c0_31 = arith.constant 0 : index
    %109 = vector.load %arg10[%108, %c0_31] : memref<64x384xf32, #tpu.memory_space<vmem>>, vector<8x384xf32>
    %cst_32 = arith.constant dense<0.000000e+00> : vector<8x384xf32>
    %110 = tpu.matmul %105, %11, %cst_32 {dimension_numbers = #tpu.dot_dimension_numbers<[1], [0], [0], [1], [0, 0, 1, 1], [], []>} : vector<8x128xf32>, vector<128x384xf32>, vector<8x384xf32> -> vector<8x384xf32>
    %111 = arith.addf %110, %14 : vector<8x384xf32>
    %112 = vector.extract_strided_slice %109 {offsets = [0, 0], sizes = [8, 128], strides = [1, 1]} : vector<8x384xf32> to vector<8x128xf32>
    %113 = vector.extract_strided_slice %109 {offsets = [0, 128], sizes = [8, 128], strides = [1, 1]} : vector<8x384xf32> to vector<8x128xf32>
    %114 = vector.extract_strided_slice %109 {offsets = [0, 256], sizes = [8, 128], strides = [1, 1]} : vector<8x384xf32> to vector<8x128xf32>
    %115 = vector.extract_strided_slice %111 {offsets = [0, 0], sizes = [8, 128], strides = [1, 1]} : vector<8x384xf32> to vector<8x128xf32>
    %116 = vector.extract_strided_slice %111 {offsets = [0, 128], sizes = [8, 128], strides = [1, 1]} : vector<8x384xf32> to vector<8x128xf32>
    %117 = vector.extract_strided_slice %111 {offsets = [0, 256], sizes = [8, 128], strides = [1, 1]} : vector<8x384xf32> to vector<8x128xf32>
    %118 = arith.addf %112, %115 : vector<8x128xf32>
    %119 = arith.negf %118 : vector<8x128xf32>
    %120 = math.exp %119 : vector<8x128xf32>
    %cst_33 = arith.constant 1.000000e+00 : f32
    %121 = vector.broadcast %cst_33 : f32 to vector<8x128xf32>
    %122 = arith.addf %121, %120 : vector<8x128xf32>
    %123 = arith.divf %121, %122 : vector<8x128xf32>
    %124 = arith.addf %113, %116 : vector<8x128xf32>
    %125 = arith.negf %124 : vector<8x128xf32>
    %126 = math.exp %125 : vector<8x128xf32>
    %cst_34 = arith.constant 1.000000e+00 : f32
    %127 = vector.broadcast %cst_34 : f32 to vector<8x128xf32>
    %128 = arith.addf %127, %126 : vector<8x128xf32>
    %129 = arith.divf %127, %128 : vector<8x128xf32>
    %130 = arith.mulf %123, %117 : vector<8x128xf32>
    %131 = arith.addf %114, %130 : vector<8x128xf32>
    %132 = math.tanh %131 : vector<8x128xf32>
    %133 = arith.subf %105, %132 : vector<8x128xf32>
    %134 = arith.mulf %129, %133 : vector<8x128xf32>
    %135 = arith.addf %132, %134 : vector<8x128xf32>
    %c4_i32 = arith.constant 4 : i32
    %c8_i32_35 = arith.constant 8 : i32
    %136 = arith.muli %c4_i32, %c8_i32_35 : i32
    %137 = tpu.assume_multiple %136, 8 : i32
    %138 = arith.index_cast %137 : i32 to index
    %c0_36 = arith.constant 0 : index
    %139 = vector.load %arg10[%138, %c0_36] : memref<64x384xf32, #tpu.memory_space<vmem>>, vector<8x384xf32>
    %cst_37 = arith.constant dense<0.000000e+00> : vector<8x384xf32>
    %140 = tpu.matmul %135, %11, %cst_37 {dimension_numbers = #tpu.dot_dimension_numbers<[1], [0], [0], [1], [0, 0, 1, 1], [], []>} : vector<8x128xf32>, vector<128x384xf32>, vector<8x384xf32> -> vector<8x384xf32>
    %141 = arith.addf %140, %14 : vector<8x384xf32>
    %142 = vector.extract_strided_slice %139 {offsets = [0, 0], sizes = [8, 128], strides = [1, 1]} : vector<8x384xf32> to vector<8x128xf32>
    %143 = vector.extract_strided_slice %139 {offsets = [0, 128], sizes = [8, 128], strides = [1, 1]} : vector<8x384xf32> to vector<8x128xf32>
    %144 = vector.extract_strided_slice %139 {offsets = [0, 256], sizes = [8, 128], strides = [1, 1]} : vector<8x384xf32> to vector<8x128xf32>
    %145 = vector.extract_strided_slice %141 {offsets = [0, 0], sizes = [8, 128], strides = [1, 1]} : vector<8x384xf32> to vector<8x128xf32>
    %146 = vector.extract_strided_slice %141 {offsets = [0, 128], sizes = [8, 128], strides = [1, 1]} : vector<8x384xf32> to vector<8x128xf32>
    %147 = vector.extract_strided_slice %141 {offsets = [0, 256], sizes = [8, 128], strides = [1, 1]} : vector<8x384xf32> to vector<8x128xf32>
    %148 = arith.addf %142, %145 : vector<8x128xf32>
    %149 = arith.negf %148 : vector<8x128xf32>
    %150 = math.exp %149 : vector<8x128xf32>
    %cst_38 = arith.constant 1.000000e+00 : f32
    %151 = vector.broadcast %cst_38 : f32 to vector<8x128xf32>
    %152 = arith.addf %151, %150 : vector<8x128xf32>
    %153 = arith.divf %151, %152 : vector<8x128xf32>
    %154 = arith.addf %143, %146 : vector<8x128xf32>
    %155 = arith.negf %154 : vector<8x128xf32>
    %156 = math.exp %155 : vector<8x128xf32>
    %cst_39 = arith.constant 1.000000e+00 : f32
    %157 = vector.broadcast %cst_39 : f32 to vector<8x128xf32>
    %158 = arith.addf %157, %156 : vector<8x128xf32>
    %159 = arith.divf %157, %158 : vector<8x128xf32>
    %160 = arith.mulf %153, %147 : vector<8x128xf32>
    %161 = arith.addf %144, %160 : vector<8x128xf32>
    %162 = math.tanh %161 : vector<8x128xf32>
    %163 = arith.subf %135, %162 : vector<8x128xf32>
    %164 = arith.mulf %159, %163 : vector<8x128xf32>
    %165 = arith.addf %162, %164 : vector<8x128xf32>
    %c5_i32 = arith.constant 5 : i32
    %c8_i32_40 = arith.constant 8 : i32
    %166 = arith.muli %c5_i32, %c8_i32_40 : i32
    %167 = tpu.assume_multiple %166, 8 : i32
    %168 = arith.index_cast %167 : i32 to index
    %c0_41 = arith.constant 0 : index
    %169 = vector.load %arg10[%168, %c0_41] : memref<64x384xf32, #tpu.memory_space<vmem>>, vector<8x384xf32>
    %cst_42 = arith.constant dense<0.000000e+00> : vector<8x384xf32>
    %170 = tpu.matmul %165, %11, %cst_42 {dimension_numbers = #tpu.dot_dimension_numbers<[1], [0], [0], [1], [0, 0, 1, 1], [], []>} : vector<8x128xf32>, vector<128x384xf32>, vector<8x384xf32> -> vector<8x384xf32>
    %171 = arith.addf %170, %14 : vector<8x384xf32>
    %172 = vector.extract_strided_slice %169 {offsets = [0, 0], sizes = [8, 128], strides = [1, 1]} : vector<8x384xf32> to vector<8x128xf32>
    %173 = vector.extract_strided_slice %169 {offsets = [0, 128], sizes = [8, 128], strides = [1, 1]} : vector<8x384xf32> to vector<8x128xf32>
    %174 = vector.extract_strided_slice %169 {offsets = [0, 256], sizes = [8, 128], strides = [1, 1]} : vector<8x384xf32> to vector<8x128xf32>
    %175 = vector.extract_strided_slice %171 {offsets = [0, 0], sizes = [8, 128], strides = [1, 1]} : vector<8x384xf32> to vector<8x128xf32>
    %176 = vector.extract_strided_slice %171 {offsets = [0, 128], sizes = [8, 128], strides = [1, 1]} : vector<8x384xf32> to vector<8x128xf32>
    %177 = vector.extract_strided_slice %171 {offsets = [0, 256], sizes = [8, 128], strides = [1, 1]} : vector<8x384xf32> to vector<8x128xf32>
    %178 = arith.addf %172, %175 : vector<8x128xf32>
    %179 = arith.negf %178 : vector<8x128xf32>
    %180 = math.exp %179 : vector<8x128xf32>
    %cst_43 = arith.constant 1.000000e+00 : f32
    %181 = vector.broadcast %cst_43 : f32 to vector<8x128xf32>
    %182 = arith.addf %181, %180 : vector<8x128xf32>
    %183 = arith.divf %181, %182 : vector<8x128xf32>
    %184 = arith.addf %173, %176 : vector<8x128xf32>
    %185 = arith.negf %184 : vector<8x128xf32>
    %186 = math.exp %185 : vector<8x128xf32>
    %cst_44 = arith.constant 1.000000e+00 : f32
    %187 = vector.broadcast %cst_44 : f32 to vector<8x128xf32>
    %188 = arith.addf %187, %186 : vector<8x128xf32>
    %189 = arith.divf %187, %188 : vector<8x128xf32>
    %190 = arith.mulf %183, %177 : vector<8x128xf32>
    %191 = arith.addf %174, %190 : vector<8x128xf32>
    %192 = math.tanh %191 : vector<8x128xf32>
    %193 = arith.subf %165, %192 : vector<8x128xf32>
    %194 = arith.mulf %189, %193 : vector<8x128xf32>
    %195 = arith.addf %192, %194 : vector<8x128xf32>
    %c6_i32 = arith.constant 6 : i32
    %c8_i32_45 = arith.constant 8 : i32
    %196 = arith.muli %c6_i32, %c8_i32_45 : i32
    %197 = tpu.assume_multiple %196, 8 : i32
    %198 = arith.index_cast %197 : i32 to index
    %c0_46 = arith.constant 0 : index
    %199 = vector.load %arg10[%198, %c0_46] : memref<64x384xf32, #tpu.memory_space<vmem>>, vector<8x384xf32>
    %cst_47 = arith.constant dense<0.000000e+00> : vector<8x384xf32>
    %200 = tpu.matmul %195, %11, %cst_47 {dimension_numbers = #tpu.dot_dimension_numbers<[1], [0], [0], [1], [0, 0, 1, 1], [], []>} : vector<8x128xf32>, vector<128x384xf32>, vector<8x384xf32> -> vector<8x384xf32>
    %201 = arith.addf %200, %14 : vector<8x384xf32>
    %202 = vector.extract_strided_slice %199 {offsets = [0, 0], sizes = [8, 128], strides = [1, 1]} : vector<8x384xf32> to vector<8x128xf32>
    %203 = vector.extract_strided_slice %199 {offsets = [0, 128], sizes = [8, 128], strides = [1, 1]} : vector<8x384xf32> to vector<8x128xf32>
    %204 = vector.extract_strided_slice %199 {offsets = [0, 256], sizes = [8, 128], strides = [1, 1]} : vector<8x384xf32> to vector<8x128xf32>
    %205 = vector.extract_strided_slice %201 {offsets = [0, 0], sizes = [8, 128], strides = [1, 1]} : vector<8x384xf32> to vector<8x128xf32>
    %206 = vector.extract_strided_slice %201 {offsets = [0, 128], sizes = [8, 128], strides = [1, 1]} : vector<8x384xf32> to vector<8x128xf32>
    %207 = vector.extract_strided_slice %201 {offsets = [0, 256], sizes = [8, 128], strides = [1, 1]} : vector<8x384xf32> to vector<8x128xf32>
    %208 = arith.addf %202, %205 : vector<8x128xf32>
    %209 = arith.negf %208 : vector<8x128xf32>
    %210 = math.exp %209 : vector<8x128xf32>
    %cst_48 = arith.constant 1.000000e+00 : f32
    %211 = vector.broadcast %cst_48 : f32 to vector<8x128xf32>
    %212 = arith.addf %211, %210 : vector<8x128xf32>
    %213 = arith.divf %211, %212 : vector<8x128xf32>
    %214 = arith.addf %203, %206 : vector<8x128xf32>
    %215 = arith.negf %214 : vector<8x128xf32>
    %216 = math.exp %215 : vector<8x128xf32>
    %cst_49 = arith.constant 1.000000e+00 : f32
    %217 = vector.broadcast %cst_49 : f32 to vector<8x128xf32>
    %218 = arith.addf %217, %216 : vector<8x128xf32>
    %219 = arith.divf %217, %218 : vector<8x128xf32>
    %220 = arith.mulf %213, %207 : vector<8x128xf32>
    %221 = arith.addf %204, %220 : vector<8x128xf32>
    %222 = math.tanh %221 : vector<8x128xf32>
    %223 = arith.subf %195, %222 : vector<8x128xf32>
    %224 = arith.mulf %219, %223 : vector<8x128xf32>
    %225 = arith.addf %222, %224 : vector<8x128xf32>
    %c7_i32 = arith.constant 7 : i32
    %c8_i32_50 = arith.constant 8 : i32
    %226 = arith.muli %c7_i32, %c8_i32_50 : i32
    %227 = tpu.assume_multiple %226, 8 : i32
    %228 = arith.index_cast %227 : i32 to index
    %c0_51 = arith.constant 0 : index
    %229 = vector.load %arg10[%228, %c0_51] : memref<64x384xf32, #tpu.memory_space<vmem>>, vector<8x384xf32>
    %cst_52 = arith.constant dense<0.000000e+00> : vector<8x384xf32>
    %230 = tpu.matmul %225, %11, %cst_52 {dimension_numbers = #tpu.dot_dimension_numbers<[1], [0], [0], [1], [0, 0, 1, 1], [], []>} : vector<8x128xf32>, vector<128x384xf32>, vector<8x384xf32> -> vector<8x384xf32>
    %231 = arith.addf %230, %14 : vector<8x384xf32>
    %232 = vector.extract_strided_slice %229 {offsets = [0, 0], sizes = [8, 128], strides = [1, 1]} : vector<8x384xf32> to vector<8x128xf32>
    %233 = vector.extract_strided_slice %229 {offsets = [0, 128], sizes = [8, 128], strides = [1, 1]} : vector<8x384xf32> to vector<8x128xf32>
    %234 = vector.extract_strided_slice %229 {offsets = [0, 256], sizes = [8, 128], strides = [1, 1]} : vector<8x384xf32> to vector<8x128xf32>
    %235 = vector.extract_strided_slice %231 {offsets = [0, 0], sizes = [8, 128], strides = [1, 1]} : vector<8x384xf32> to vector<8x128xf32>
    %236 = vector.extract_strided_slice %231 {offsets = [0, 128], sizes = [8, 128], strides = [1, 1]} : vector<8x384xf32> to vector<8x128xf32>
    %237 = vector.extract_strided_slice %231 {offsets = [0, 256], sizes = [8, 128], strides = [1, 1]} : vector<8x384xf32> to vector<8x128xf32>
    %238 = arith.addf %232, %235 : vector<8x128xf32>
    %239 = arith.negf %238 : vector<8x128xf32>
    %240 = math.exp %239 : vector<8x128xf32>
    %cst_53 = arith.constant 1.000000e+00 : f32
    %241 = vector.broadcast %cst_53 : f32 to vector<8x128xf32>
    %242 = arith.addf %241, %240 : vector<8x128xf32>
    %243 = arith.divf %241, %242 : vector<8x128xf32>
    %244 = arith.addf %233, %236 : vector<8x128xf32>
    %245 = arith.negf %244 : vector<8x128xf32>
    %246 = math.exp %245 : vector<8x128xf32>
    %cst_54 = arith.constant 1.000000e+00 : f32
    %247 = vector.broadcast %cst_54 : f32 to vector<8x128xf32>
    %248 = arith.addf %247, %246 : vector<8x128xf32>
    %249 = arith.divf %247, %248 : vector<8x128xf32>
    %250 = arith.mulf %243, %237 : vector<8x128xf32>
    %251 = arith.addf %234, %250 : vector<8x128xf32>
    %252 = math.tanh %251 : vector<8x128xf32>
    %253 = arith.subf %225, %252 : vector<8x128xf32>
    %254 = arith.mulf %249, %253 : vector<8x128xf32>
    %255 = arith.addf %252, %254 : vector<8x128xf32>
    %c8_i32_55 = arith.constant 8 : i32
    %c0_56 = arith.constant 0 : index
    %c0_57 = arith.constant 0 : index
    %256 = vector.load %arg11[%c0_56, %c0_57] : memref<8x128xf32, #tpu.memory_space<vmem>>, vector<8x128xf32>
    tpu.vector_store %arg11[%c0_56, %c0_57], %255 {strides = array<i32>} : memref<8x128xf32, #tpu.memory_space<vmem>>, vector<8x128xf32>,
    %c0_i32_58 = arith.constant 0 : i32
    %257 = arith.cmpi eq, %arg1, %c0_i32_58 : i32
    %258 = arith.extui %257 : i1 to i32
    %c0_i32_59 = arith.constant 0 : i32
    %259 = arith.cmpi ne, %258, %c0_i32_59 : i32
    scf.if %259 {
      %c0_60 = arith.constant 0 : index
      %c0_61 = arith.constant 0 : index
      %260 = vector.load %arg7[%c0_60, %c0_61] : memref<128x128xf32, #tpu.memory_space<vmem>>, vector<128x128xf32>
      %cst_62 = arith.constant dense<0.000000e+00> : vector<8x128xf32>
      %261 = tpu.matmul %255, %260, %cst_62 {dimension_numbers = #tpu.dot_dimension_numbers<[1], [0], [0], [1], [0, 0, 1, 1], [], []>} : vector<8x128xf32>, vector<128x128xf32>, vector<8x128xf32> -> vector<8x128xf32>
      %c0_63 = arith.constant 0 : index
      %c0_64 = arith.constant 0 : index
      %262 = vector.load %arg8[%c0_63, %c0_64] : memref<1x128xf32, #tpu.memory_space<vmem>>, vector<1x128xf32>
      %263 = vector.broadcast %262 : vector<1x128xf32> to vector<8x128xf32>
      %264 = arith.addf %261, %263 : vector<8x128xf32>
      %c0_65 = arith.constant 0 : index
      %c0_66 = arith.constant 0 : index
      %265 = vector.load %arg9[%c0_65, %c0_66] : memref<8x128xf32, #tpu.memory_space<vmem>>, vector<8x128xf32>
      tpu.vector_store %arg9[%c0_65, %c0_66], %264 {strides = array<i32>} : memref<8x128xf32, #tpu.memory_space<vmem>>, vector<8x128xf32>,
    } else {
    }
    return
  }
  func.func @transform_0(%arg0: i32, %arg1: i32) -> (i32, i32, i32) {
    %c0_i32 = arith.constant 0 : i32
    %c0_i32_0 = arith.constant 0 : i32
    return %arg0, %arg1, %c0_i32 : i32, i32, i32
  }
  func.func @transform_1(%arg0: i32, %arg1: i32) -> (i32, i32) {
    %c0_i32 = arith.constant 0 : i32
    %c0_i32_0 = arith.constant 0 : i32
    %c0_i32_1 = arith.constant 0 : i32
    return %c0_i32, %c0_i32_0 : i32, i32
  }
  func.func @transform_2(%arg0: i32, %arg1: i32) -> (i32, i32) {
    %c0_i32 = arith.constant 0 : i32
    %c0_i32_0 = arith.constant 0 : i32
    %c0_i32_1 = arith.constant 0 : i32
    return %c0_i32, %c0_i32_0 : i32, i32
  }
  func.func @transform_3(%arg0: i32, %arg1: i32) -> (i32, i32) {
    %c0_i32 = arith.constant 0 : i32
    %c0_i32_0 = arith.constant 0 : i32
    %c0_i32_1 = arith.constant 0 : i32
    return %c0_i32, %c0_i32_0 : i32, i32
  }
  func.func @transform_4(%arg0: i32, %arg1: i32) -> (i32, i32) {
    %c0_i32 = arith.constant 0 : i32
    %c0_i32_0 = arith.constant 0 : i32
    %c0_i32_1 = arith.constant 0 : i32
    return %c0_i32, %c0_i32_0 : i32, i32
  }
  func.func @transform_5(%arg0: i32, %arg1: i32) -> (i32, i32) {
    %c0_i32 = arith.constant 0 : i32
    %c0_i32_0 = arith.constant 0 : i32
    %c0_i32_1 = arith.constant 0 : i32
    return %c0_i32, %c0_i32_0 : i32, i32
  }
  func.func @transform_6(%arg0: i32, %arg1: i32) -> (i32, i32) {
    %c0_i32 = arith.constant 0 : i32
    %c0_i32_0 = arith.constant 0 : i32
    %c0_i32_1 = arith.constant 0 : i32
    return %c0_i32, %c0_i32_0 : i32, i32
  }
  func.func @transform_7(%arg0: i32, %arg1: i32) -> (i32, i32) {
    %c0_i32 = arith.constant 0 : i32
    %c0_i32_0 = arith.constant 0 : i32
    return %arg0, %c0_i32 : i32, i32
  }
}

</mosaic_0001>

<bundles_post_ra>
// kernel: tpu_custom_call.1
= control target key start
LH: loop header
LB: loop body
LE: loop exit
PB: predicated region body
PF: predicated region fallthrough
CT: control target
= control target key end

     0   :  { %12 = vsyncpa [#allocation5], 0  ;;  %s3821_s0 = inlined_call_operand.hbm [shape: f32[1,64,128], index: 0, kind: input, shape index: {}]   ;;  %s3822_s1 = inlined_call_operand.hbm [shape: f32[128,384], index: 1, kind: input, shape index: {}]   ;;  %s3823_s2 = inlined_call_operand.vmem [shape: f32[1,384], index: 2, kind: input, shape index: {}]   ;;  %s3824_s3 = inlined_call_operand.hbm [shape: f32[128,384], index: 3, kind: input, shape index: {}]   ;;  %s3825_s4 = inlined_call_operand.vmem [shape: f32[1,384], index: 4, kind: input, shape index: {}]   ;;  %s3826_s5 = inlined_call_operand.hbm [shape: f32[128,128], index: 5, kind: input, shape index: {}]   ;;  %s3827_s6 = inlined_call_operand.vmem [shape: f32[1,128], index: 6, kind: input, shape index: {}]   ;;  %s3828_s7 = inlined_call_operand.hbm [shape: f32[8,128], index: 7, kind: output, shape index: {}]  }
   0x1   :  { %13 = vsyncpa [#allocation8], 0 }
   0x2   :  { %14 = vsyncpa [#allocation11], 0 }
   0x3   :  { %15 = vsyncpa [#allocation6], 0  ;;  %s3273_s24 = smov [#allocation7]   ;;  %s3155_s28 = scalar_lea.hbm %s3822_s1, 6144 }
   0x4   :  { %s33_s25 = sshll.u32 %s3273_s24, 4  ;;  %p3156_p0 = scmp.ne.s32.totalorder %s3822_s1, %s3155_s28  ;;  %s34_s25 = int_to_ptr.vmem [resolvable:$true] %s33_s25 }
   0x5   :  { %p3159_p1 = scmp.lt.u32.totalorder %s3155_s28, %s3822_s1 }
   0x7   :  { %p3161_p2 = pnand %p3159_p1, %p3156_p0 }
   0x9   :  { %3164 = shalt.err (!%p3161_p2)
}
   0xa   :  { %s3165_s10 = scalar_lea.vmem %s34_s25, 6144  ;;  %p3170_p4 = scmp.lt.s32.totalorder %s34_s25, %s34_s25 }
   0xb   :  { %p3166_p3 = scmp.ne.s32.totalorder %s34_s25, %s3165_s10  ;;  %p3171_p5 = scmp.lt.s32.totalorder %s3165_s10, %s3165_s10 }
   0xd   :  { %p3172_p6 = por %p3171_p5, %p3170_p4 }
   0xf   :  { %p3173_p7 = pnand %p3172_p6, %p3166_p3 }
  0x11   :  { %3176 = shalt.err (!%p3173_p7)
}
  0x12   :  { %s3274_s11 = smov 384   ;;  %s3275_s12 = smov 24  }
  0x13   :  { %39 = dma.hbm_to_vmem [thread:$0]  %s3822_s1, 6144, %s34_s25, [#allocation8], %s3274_s11, %s3274_s11, %s3275_s12  }
  0x14   :  { %s3276_s15 = smov [#allocation4]   ;;  %s3177_s19 = scalar_lea.hbm %s3821_s0, 1024 }
  0x15   :  { %s21_s16 = sshll.u32 %s3276_s15, 4  ;;  %p3178_p8 = scmp.ne.s32.totalorder %s3821_s0, %s3177_s19  ;;  %s22_s16 = int_to_ptr.vmem [resolvable:$true] %s21_s16 }
  0x16   :  { %p3181_p9 = scmp.lt.u32.totalorder %s3177_s19, %s3821_s0 }
  0x18   :  { %p3183_p10 = pnand %p3181_p9, %p3178_p8 }
  0x1a   :  { %3186 = shalt.err (!%p3183_p10)
}
  0x1b   :  { %s3187_s24 = scalar_lea.vmem %s22_s16, 1024  ;;  %p3192_p12 = scmp.lt.s32.totalorder %s22_s16, %s22_s16 }
  0x1c   :  { %p3188_p11 = scmp.ne.s32.totalorder %s22_s16, %s3187_s24  ;;  %p3193_p13 = scmp.lt.s32.totalorder %s3187_s24, %s3187_s24 }
  0x1e   :  { %p3194_p0 = por %p3193_p13, %p3192_p12 }
  0x20   :  { %p3195_p1 = pnand %p3194_p0, %p3188_p11 }
  0x22   :  { %3198 = shalt.err (!%p3195_p1)
}
  0x23   :  { %s3277_s1 = smov 128   ;;  %s3278_s25 = smov 8  }
  0x24   :  { %27 = dma.hbm_to_vmem [thread:$0]  %s3821_s0, 1024, %s22_s16, [#allocation5], %s3277_s1, %s3277_s1, %s3278_s25  }
  0x25   :  { %s3279_s28 = smov [#allocation9]   ;;  %s3280_s30 = smov [#allocation10]  }
  0x26   :  { %s47_s29 = sshll.u32 %s3279_s28, 4  ;;  %s61_s8 = sshll.u32 %s3280_s30, 4  ;;  %s48_s29 = int_to_ptr.vmem [resolvable:$true] %s47_s29  ;;  %s3355_s8 = int_to_ptr.vmem [resolvable:$true] %s61_s8 }
  0x27   :  { %s3199_s13 = scalar_lea.hbm %s3824_s3, 6144 }
  0x28   :  { %p3200_p2 = scmp.ne.s32.totalorder %s3824_s3, %s3199_s13  ;;  %p3203_p3 = scmp.lt.u32.totalorder %s3199_s13, %s3824_s3 }
  0x2a   :  { %p3205_p4 = pnand %p3203_p3, %p3200_p2 }
  0x2c   :  { %3208 = shalt.err (!%p3205_p4)
}
  0x2d   :  { %s3209_s0 = scalar_lea.vmem %s48_s29, 6144  ;;  %p3214_p6 = scmp.lt.s32.totalorder %s48_s29, %s48_s29 }
  0x2e   :  { %p3210_p5 = scmp.ne.s32.totalorder %s48_s29, %s3209_s0  ;;  %p3215_p7 = scmp.lt.s32.totalorder %s3209_s0, %s3209_s0 }
  0x30   :  { %p3216_p8 = por %p3215_p7, %p3214_p6 }
  0x32   :  { %p3217_p9 = pnand %p3216_p8, %p3210_p5 }
  0x34   :  { %3220 = shalt.err (!%p3217_p9)
}
  0x35   :  { %53 = dma.hbm_to_vmem [thread:$0]  %s3824_s3, 6144, %s48_s29, [#allocation8], %s3274_s11, %s3274_s11, %s3275_s12  }
  0x36   :  { %s3221_s22 = scalar_lea.hbm %s3826_s5, 2048 }
  0x37   :  { %p3222_p10 = scmp.ne.s32.totalorder %s3826_s5, %s3221_s22  ;;  %p3225_p11 = scmp.lt.u32.totalorder %s3221_s22, %s3826_s5 }
  0x39   :  { %p3227_p12 = pnand %p3225_p11, %p3222_p10 }
  0x3b   :  { %3230 = shalt.err (!%p3227_p12)
}
  0x3c   :  { %s3231_s28 = scalar_lea.vmem %s3355_s8, 2048  ;;  %p3236_p0 = scmp.lt.s32.totalorder %s3355_s8, %s3355_s8 }
  0x3d   :  { %p3232_p13 = scmp.ne.s32.totalorder %s3355_s8, %s3231_s28  ;;  %p3237_p1 = scmp.lt.s32.totalorder %s3231_s28, %s3231_s28 }
  0x3f   :  { %p3238_p2 = por %p3237_p1, %p3236_p0 }
  0x41   :  { %p3239_p3 = pnand %p3238_p2, %p3232_p13 }
  0x43   :  { %3242 = shalt.err (!%p3239_p3)
}
  0x44   :  { %67 = dma.hbm_to_vmem [thread:$0]  %s3826_s5, 2048, %s3355_s8, [#allocation11], %s3277_s1, %s3277_s1, %s3278_s25  }
  0x45   :  { %3265 = dma.done.wait [#allocation5], 1024  }
  0x46   :  { %3266 = vsyncadd [#allocation5], 4294966272 }
  0x47   :  { %3267 = dma.done.wait [#allocation8], 12288  }
  0x48   :  { %3268 = vsyncadd [#allocation8], 4294955008 }
  0x49   :  { %3269 = dma.done.wait [#allocation11], 2048  }
  0x4a   :  { %3270 = vsyncadd [#allocation11], 4294965248  ;;  %v3281_v0 = vmov 0.0   ;;  %v96_v1 = vld [vmem:[#allocation7 + $0x8] sm:$0xff]  ;;  %v99_v2 = vld [vmem:[#allocation7 + $0x20] sm:$0xff]  ;;  %vm3283_vm0 = vmmov 0  }
  0x4b   :  { %224 = vmatprep.mubr.f32.mxu0 %v3281_v0  ;;  %v95_v3 = vld [vmem:[#allocation7] sm:$0xff]  ;;  %v2479_v4 = vpack.c.bf16 %v99_v2, %v96_v1  ;;  %v98_v5 = vld [vmem:[#allocation7 + $0x18] sm:$0xff]  ;;  %v105_v7 = vld [vmem:[#allocation7 + $0x50] sm:$0xff]  ;;  %s3284_s29 = smov [#allocation12]  }
  0x4c   :  { %v102_v6 = vld [vmem:[#allocation7 + $0x38] sm:$0xff]  ;;  %v2481_v8 = vpack.c.bf16 %v98_v5, %v95_v3  ;;  %v101_v10 = vld [vmem:[#allocation7 + $0x30] sm:$0xff]  ;;  %v104_v11 = vld [vmem:[#allocation7 + $0x48] sm:$0xff]  ;;  %s1908_s30 = sshll.u32 %s3284_s29, 4  ;;  %s1909_s30 = int_to_ptr.vmem [resolvable:$true] %s1908_s30 }
  0x4d   :  { %v2483_v9 = vpack.c.bf16 %v105_v7, %v102_v6  ;;  %v108_v12 = vld [vmem:[#allocation7 + $0x68] sm:$0xff]  ;;  %2480 = vmatprep.subr.bf16.mxu0 %v2479_v4  ;;  %v111_v13 = vld [vmem:[#allocation7 + $0x80] sm:$0xff]  ;;  %v2485_v14 = vpack.c.bf16 %v104_v11, %v101_v10  ;;  %v110_v17 = vld [vmem:[#allocation7 + $0x78] sm:$0xff]  ;;  %s3243_s8 = scalar_lea.vmem %s1909_s30, 128  ;;  %p3248_p5 = scmp.lt.s32.totalorder %s1909_s30, %s1909_s30 }
  0x4e   :  { %2482 = vmatpush1.bf16.msra.mxu0 %v2481_v8  ;;  %v2487_v15 = vpack.c.bf16 %v111_v13, %v108_v12  ;;  %v107_v16 = vld [vmem:[#allocation7 + $0x60] sm:$0xff]  ;;  %v114_v18 = vld [vmem:[#allocation7 + $0x98] sm:$0xff]  ;;  %v117_v19 = vld [vmem:[#allocation7 + $0xb0] sm:$0xff]  ;;  %p3244_p4 = scmp.ne.s32.totalorder %s1909_s30, %s3243_s8  ;;  %p3249_p6 = scmp.lt.s32.totalorder %s3243_s8, %s3243_s8 }
  0x4f   :  { %2484 = vmatprep.subr.bf16.mxu0 %v2483_v9  ;;  %v2489_v20 = vpack.c.bf16 %v110_v17, %v107_v16  ;;  %v113_v21 = vld [vmem:[#allocation7 + $0x90] sm:$0xff]  ;;  %v2491_v22 = vpack.c.bf16 %v117_v19, %v114_v18  ;;  %v116_v23 = vld [vmem:[#allocation7 + $0xa8] sm:$0xff]  ;;  %v123_v27 = vld [vmem:[#allocation7 + $0xe0] sm:$0xff] }
  0x50   :  { %v97_v24 = vld [vmem:[#allocation7 + $0x10] sm:$0xff]  ;;  %v100_v25 = vld [vmem:[#allocation7 + $0x28] sm:$0xff]  ;;  %v103_v29 = vld [vmem:[#allocation7 + $0x40] sm:$0xff]  ;;  %v2493_v31 = vpack.c.bf16 %v116_v23, %v113_v21  ;;  %p3250_p7 = por %p3249_p6, %p3248_p5 }
  0x51   :  { %v120_v26 = vld [vmem:[#allocation7 + $0xc8] sm:$0xff]  ;;  %v2511_v28 = vpack.c.bf16 %v100_v25, %v97_v24  ;;  %v106_v30 = vld [vmem:[#allocation7 + $0x58] sm:$0xff]  ;;  %v119_v32 = vld [vmem:[#allocation7 + $0xc0] sm:$0xff] }
  0x52   :  { %2486 = vmatpush1.bf16.msra.mxu0 %v2485_v14  ;;  %v2515_v33 = vpack.c.bf16 %v106_v30, %v103_v29  ;;  %v2495_v34 = vpack.c.bf16 %v123_v27, %v120_v26  ;;  %v122_v35 = vld [vmem:[#allocation7 + $0xd8] sm:$0xff]  ;;  %v3393_v36 = vld [vmem:[#allocation4] sm:$0xff]  ;;  %v109_v37 = vld [vmem:[#allocation7 + $0x70] sm:$0xff]  ;;  %p3251_p8 = pnand %p3250_p7, %p3244_p4 }
  0x53   :  { %2488 = vmatprep.subr.bf16.mxu0 %v2487_v15  ;;  %2512 = vmatprep.subr.bf16.mxu1 %v2511_v28  ;;  %v126_v38 = vld [vmem:[#allocation7 + $0xf8] sm:$0xff]  ;;  %v129_v39 = vld [vmem:[#allocation7 + $0x110] sm:$0xff]  ;;  %v112_v40 = vld [vmem:[#allocation7 + $0x88] sm:$0xff]  ;;  %v2497_v42 = vpack.c.bf16 %v122_v35, %v119_v32 }
  0x54   :  { %2514 = vmatpush3.bf16.msra.mxu1 %v2511_v28  ;;  %2152 = vmatprep.mubr.f32.mxu1 %v3393_v36  ;;  %v2519_v41 = vpack.c.bf16 %v112_v40, %v109_v37  ;;  %v115_v43 = vld [vmem:[#allocation7 + $0xa0] sm:$0xff]  ;;  %v118_v44 = vld [vmem:[#allocation7 + $0xb8] sm:$0xff]  ;;  %v2499_v45 = vpack.c.bf16 %v129_v39, %v126_v38  ;;  %v125_v46 = vld [vmem:[#allocation7 + $0xf0] sm:$0xff]  ;;  %v3282_v40 = vmov 0.0|0.0  }
  0x55   :  { %2516 = vmatprep.subr.bf16.mxu1 %v2515_v33  ;;  %v128_v47 = vld [vmem:[#allocation7 + $0x108] sm:$0xff]  ;;  %v135_v49 = vld [vmem:[#allocation7 + $0x140] sm:$0xff]  ;;  %v2523_v50 = vpack.c.bf16 %v118_v44, %v115_v43  ;;  %v121_v51 = vld [vmem:[#allocation7 + $0xd0] sm:$0xff] }
  0x56   :  { %2490 = vmatpush1.bf16.msra.mxu0 %v2489_v20  ;;  %v132_v48 = vld [vmem:[#allocation7 + $0x128] sm:$0xff]  ;;  %v2501_v53 = vpack.c.bf16 %v128_v47, %v125_v46  ;;  %v131_v55 = vld [vmem:[#allocation7 + $0x120] sm:$0xff]  ;;  %v134_v56 = vld [vmem:[#allocation7 + $0x138] sm:$0xff] }
  0x57   :  { %2492 = vmatprep.subr.bf16.mxu0 %v2491_v22  ;;  %v124_v52 = vld [vmem:[#allocation7 + $0xe8] sm:$0xff]  ;;  %v2503_v54 = vpack.c.bf16 %v135_v49, %v132_v48  ;;  %v138_v57 = vld [vmem:[#allocation7 + $0x158] sm:$0xff]  ;;  %v141_v58 = vld [vmem:[#allocation7 + $0x170] sm:$0xff]  ;;  %v2505_v62 = vpack.c.bf16 %v134_v56, %v131_v55 }
  0x58   :  { %2518 = vmatpush3.bf16.msra.mxu1 %v2515_v33  ;;  %v2527_v59 = vpack.c.bf16 %v124_v52, %v121_v51  ;;  %v127_v60 = vld [vmem:[#allocation7 + $0x100] sm:$0xff]  ;;  %v130_v61 = vld [vmem:[#allocation7 + $0x118] sm:$0xff]  ;;  %v2507_v63 = vpack.c.bf16 %v141_v58, %v138_v57  ;;  %v137_v1 = vld [vmem:[#allocation7 + $0x150] sm:$0xff] }
  0x59   :  { %2520 = vmatprep.subr.bf16.mxu1 %v2519_v41  ;;  %v140_v2 = vld [vmem:[#allocation7 + $0x168] sm:$0xff]  ;;  %v406_v4 = vld [vmem:[#allocation9 + $0x20] sm:$0xff]  ;;  %v2531_v5 = vpack.c.bf16 %v130_v61, %v127_v60  ;;  %v133_v6 = vld [vmem:[#allocation7 + $0x130] sm:$0xff] }
  0x5a   :  { %2494 = vmatpush1.bf16.msra.mxu0 %v2493_v31  ;;  %v403_v3 = vld [vmem:[#allocation9 + $0x8] sm:$0xff]  ;;  %v2509_v8 = vpack.c.bf16 %v140_v2, %v137_v1  ;;  %v402_v10 = vld [vmem:[#allocation9] sm:$0xff]  ;;  %v405_v11 = vld [vmem:[#allocation9 + $0x18] sm:$0xff] }
  0x5b   :  { %2496 = vmatprep.subr.bf16.mxu0 %v2495_v34  ;;  %v136_v7 = vld [vmem:[#allocation7 + $0x148] sm:$0xff]  ;;  %v3396_v9 = vpack.c.bf16 %v406_v4, %v403_v3  ;;  %v409_v12 = vld [vmem:[#allocation9 + $0x38] sm:$0xff]  ;;  %v412_v13 = vld [vmem:[#allocation9 + $0x50] sm:$0xff]  ;;  %v3398_v17 = vpack.c.bf16 %v405_v11, %v402_v10 }
  0x5c   :  { %2522 = vmatpush3.bf16.msra.mxu1 %v2519_v41  ;;  %v2535_v14 = vpack.c.bf16 %v136_v7, %v133_v6  ;;  %v139_v15 = vld [vmem:[#allocation7 + $0x160] sm:$0xff]  ;;  %v142_v16 = vld [vmem:[#allocation7 + $0x178] sm:$0xff]  ;;  %v3401_v18 = vpack.c.bf16 %v412_v13, %v409_v12  ;;  %v408_v19 = vld [vmem:[#allocation9 + $0x30] sm:$0xff] }
  0x5d   :  { %2524 = vmatprep.subr.bf16.mxu1 %v2523_v50  ;;  %v411_v20 = vld [vmem:[#allocation9 + $0x48] sm:$0xff]  ;;  %v418_v22 = vld [vmem:[#allocation9 + $0x80] sm:$0xff]  ;;  %v2539_v23 = vpack.c.bf16 %v142_v16, %v139_v15  ;;  %v417_v28 = vld [vmem:[#allocation9 + $0x78] sm:$0xff] }
  0x5e   :  { %2498 = vmatpush1.bf16.msra.mxu0 %v2497_v42  ;;  %v415_v21 = vld [vmem:[#allocation9 + $0x68] sm:$0xff]  ;;  %v3406_v25 = vpack.c.bf16 %v411_v20, %v408_v19  ;;  %v414_v27 = vld [vmem:[#allocation9 + $0x60] sm:$0xff]  ;;  %v421_v29 = vld [vmem:[#allocation9 + $0x98] sm:$0xff] }
  0x5f   :  { %2500 = vmatprep.subr.bf16.mxu0 %v2499_v45  ;;  %v88_v24 = vld [vmem:[#allocation4 + $0x8] sm:$0xff]  ;;  %v3409_v26 = vpack.c.bf16 %v418_v22, %v415_v21  ;;  %v424_v30 = vld [vmem:[#allocation9 + $0xb0] sm:$0xff]  ;;  %v3413_v34 = vpack.c.bf16 %v417_v28, %v414_v27  ;;  %v430_v39 = vld [vmem:[#allocation9 + $0xe0] sm:$0xff] }
  0x60   :  { %2526 = vmatpush3.bf16.msra.mxu1 %v2523_v50  ;;  %v404_v31 = vld [vmem:[#allocation9 + $0x10] sm:$0xff]  ;;  %v407_v32 = vld [vmem:[#allocation9 + $0x28] sm:$0xff]  ;;  %v3416_v35 = vpack.c.bf16 %v424_v30, %v421_v29  ;;  %v410_v42 = vld [vmem:[#allocation9 + $0x40] sm:$0xff] }
  0x61   :  { %2528 = vmatprep.subr.bf16.mxu1 %v2527_v59  ;;  %v89_v33 = vld [vmem:[#allocation4 + $0x10] sm:$0xff]  ;;  %v423_v37 = vld [vmem:[#allocation9 + $0xa8] sm:$0xff]  ;;  %v3419_v41 = vpack.c.bf16 %v407_v32, %v404_v31  ;;  %v413_v43 = vld [vmem:[#allocation9 + $0x58] sm:$0xff] }
  0x62   :  { %2502 = vmatpush1.bf16.msra.mxu0 %v2501_v53  ;;  %v427_v38 = vld [vmem:[#allocation9 + $0xc8] sm:$0xff]  ;;  %v90_v44 = vld [vmem:[#allocation4 + $0x18] sm:$0xff]  ;;  %v426_v47 = vld [vmem:[#allocation9 + $0xc0] sm:$0xff]  ;;  %v3429_v51 = vpack.c.bf16 %v413_v43, %v410_v42 }
  0x63   :  { %2504 = vmatprep.subr.bf16.mxu0 %v2503_v54  ;;  %v3426_v46 = vpack.c.bf16 %v430_v39, %v427_v38  ;;  %v429_v48 = vld [vmem:[#allocation9 + $0xd8] sm:$0xff]  ;;  %v436_v50 = vld [vmem:[#allocation9 + $0x110] sm:$0xff]  ;;  %v419_v53 = vld [vmem:[#allocation9 + $0x88] sm:$0xff] }
  0x64   :  { %2530 = vmatpush3.bf16.msra.mxu1 %v2527_v59  ;;  %v433_v49 = vld [vmem:[#allocation9 + $0xf8] sm:$0xff]  ;;  %v416_v52 = vld [vmem:[#allocation9 + $0x70] sm:$0xff]  ;;  %v91_v54 = vld [vmem:[#allocation4 + $0x20] sm:$0xff]  ;;  %v3434_v55 = vpack.c.bf16 %v429_v48, %v426_v47 }
  0x65   :  { %2532 = vmatprep.subr.bf16.mxu1 %v2531_v5  ;;  %v3437_v56 = vpack.c.bf16 %v436_v50, %v433_v49  ;;  %v432_v57 = vld [vmem:[#allocation9 + $0xf0] sm:$0xff]  ;;  %v435_v58 = vld [vmem:[#allocation9 + $0x108] sm:$0xff]  ;;  %v442_v60 = vld [vmem:[#allocation9 + $0x140] sm:$0xff]  ;;  %v3440_v61 = vpack.c.bf16 %v419_v53, %v416_v52 }
  0x66   :  { %2506 = vmatpush1.bf16.msra.mxu0 %v2505_v62  ;;  %v439_v59 = vld [vmem:[#allocation9 + $0x128] sm:$0xff]  ;;  %v422_v62 = vld [vmem:[#allocation9 + $0xa0] sm:$0xff]  ;;  %v3445_v2 = vpack.c.bf16 %v435_v58, %v432_v57  ;;  %v93_v3 = vld [vmem:[#allocation4 + $0x30] sm:$0xff] }
  0x67   :  { %2508 = vmatprep.subr.bf16.mxu0 %v2507_v63  ;;  %v425_v63 = vld [vmem:[#allocation9 + $0xb8] sm:$0xff]  ;;  %v92_v1 = vld [vmem:[#allocation4 + $0x28] sm:$0xff]  ;;  %v3448_v4 = vpack.c.bf16 %v442_v60, %v439_v59  ;;  %v428_v11 = vld [vmem:[#allocation9 + $0xd0] sm:$0xff] }
  0x68   :  { %2534 = vmatpush3.bf16.msra.mxu1 %v2531_v5  ;;  %v438_v5 = vld [vmem:[#allocation9 + $0x120] sm:$0xff]  ;;  %v441_v6 = vld [vmem:[#allocation9 + $0x138] sm:$0xff]  ;;  %v3451_v10 = vpack.c.bf16 %v425_v63, %v422_v62  ;;  %v431_v12 = vld [vmem:[#allocation9 + $0xe8] sm:$0xff] }
  0x69   :  { %2536 = vmatprep.subr.bf16.mxu1 %v2535_v14  ;;  %v445_v7 = vld [vmem:[#allocation9 + $0x158] sm:$0xff]  ;;  %v3456_v13 = vpack.c.bf16 %v441_v6, %v438_v5  ;;  %v444_v16 = vld [vmem:[#allocation9 + $0x150] sm:$0xff]  ;;  %v447_v19 = vld [vmem:[#allocation9 + $0x168] sm:$0xff]  ;;  %v3462_v20 = vpack.c.bf16 %v431_v12, %v428_v11 }
  0x6a   :  { %2510 = vmatpush1.bf16.msra.mxu0 %v2509_v8  ;;  %v448_v8 = vld [vmem:[#allocation9 + $0x170] sm:$0xff]  ;;  %v434_v21 = vld [vmem:[#allocation9 + $0x100] sm:$0xff]  ;;  %v437_v22 = vld [vmem:[#allocation9 + $0x118] sm:$0xff] }
  0x6b   :  { %2544 = vmatprep.subr.bf16.mxu0 %v3396_v9  ;;  %v3459_v15 = vpack.c.bf16 %v448_v8, %v445_v7  ;;  %v440_v27 = vld [vmem:[#allocation9 + $0x130] sm:$0xff]  ;;  %v443_v28 = vld [vmem:[#allocation9 + $0x148] sm:$0xff]  ;;  %v446_v30 = vld [vmem:[#allocation9 + $0x160] sm:$0xff] }
  0x6c   :  { %2538 = vmatpush3.bf16.msra.mxu1 %v2535_v14  ;;  %v94_v14 = vld [vmem:[#allocation4 + $0x38] sm:$0xff]  ;;  %v3480_v29 = vpack.c.bf16 %v443_v28, %v440_v27  ;;  %v143_v38 = vld [vmem:[%s3823_s2] sm:$0x7] }
  0x6d   :  { %225 = vmatmul.mubr.f32.vlgmr.msra.gmra.mrb[0].mxu0 %v3393_v36  ;;  %2540 = vmatprep.subr.bf16.mxu1 %v2539_v23  ;;  %v420_v36 = vld [vmem:[#allocation9 + $0x90] sm:$0xff]  ;;  %v449_v31 = vld [vmem:[#allocation9 + $0x178] sm:$0xff]  ;;  %v450_v59 = vld [vmem:[%s3825_s4] sm:$0x7] }
  0x6e   :  { %2546 = vmatpush1.bf16.msra.mxu0 %v3398_v17  ;;  %230 = vmatprep.mubr.f32.mxu0 %v3281_v0  ;;  %v3423_v45 = vpack.c.bf16 %v423_v37, %v420_v36  ;;  %v3488_v32 = vpack.c.bf16 %v449_v31, %v446_v30 }
  0x6f   :  { %2548 = vmatprep.subr.bf16.mxu0 %v3401_v18 }
  0x70   :  { %2542 = vmatpush3.bf16.msra.mxu1 %v2539_v23  ;;  %v3469_v23 = vpack.c.bf16 %v447_v19, %v444_v16 }
  0x71   :  { %231 = vmatmul.mubr.f32.gmra.mrb[2].mxu0 %v88_v24  ;;  %2575 = vmatprep.subr.bf16.mxu1 %v3282_v40 }
  0x72   :  { %2550 = vmatpush1.bf16.msra.mxu0 %v3406_v25  ;;  %236 = vmatprep.mubr.f32.mxu0 %v3281_v0 }
  0x73   :  { %2552 = vmatprep.subr.bf16.mxu0 %v3409_v26  ;;  %2153 = vmatmul.mubr.f32.vlgmr.msra.gmra.mrb[0].mxu1 %v88_v24  ;;  %v3473_v24 = vpack.c.bf16 %v437_v22, %v434_v21 }
  0x74   :  { %2577 = vmatpush3.bf16.msra.mxu1 %v3419_v41  ;;  %2155 = vmatprep.mubr.f32.mxu1 %v89_v33 }
  0x75   :  { %237 = vmatmul.mubr.f32.gmra.mrb[4].mxu0 %v89_v33  ;;  %2578 = vmatprep.subr.bf16.mxu1 %v3282_v40  ;;  %v145_v33 = vlaneseq }
  0x76   :  { %2554 = vmatpush1.bf16.msra.mxu0 %v3413_v34  ;;  %242 = vmatprep.mubr.f32.mxu0 %v3281_v0 }
  0x77   :  { %2556 = vmatprep.subr.bf16.mxu0 %v3416_v35  ;;  %2156 = vmatmul.mubr.f32.gmra.mrb[2].mxu1 %v90_v44  ;;  %v146_v36 = vshrl.u32 %v145_v33, 7 }
  0x78   :  { %2580 = vmatpush3.bf16.msra.mxu1 %v3429_v51  ;;  %2158 = vmatprep.mubr.f32.mxu1 %v91_v54 }
  0x79   :  { %243 = vmatmul.mubr.f32.gmra.mrb[6].mxu0 %v90_v44  ;;  %2581 = vmatprep.subr.bf16.mxu1 %v3282_v40  ;;  %v155_v37 = vsub.s32 2, %v146_v36  ;;  %v147_v58 = vsub.s32 0, %v146_v36  ;;  %v151_v7 = vsub.s32 1, %v146_v36 }
  0x7a   :  { %2558 = vmatpush1.bf16.msra.mxu0 %v3423_v45  ;;  %248 = vmatprep.mubr.f32.mxu0 %v3281_v0 }
  0x7b   :  { %2560 = vmatprep.subr.bf16.mxu0 %v3426_v46  ;;  %2159 = vmatmul.mubr.f32.gmra.mrb[4].mxu1 %v92_v1  ;;  %v156_v39 = vrot.slane %v143_v38, %v155_v37  ;;  %v455_v5 = vrot.slane %v450_v59, %v147_v58  ;;  %v152_v12 = vrot.slane %v143_v38, %v151_v7 }
  0x7c   :  { %2583 = vmatpush3.bf16.msra.mxu1 %v3440_v61  ;;  %2161 = vmatprep.mubr.f32.mxu1 %v93_v3  ;;  %v3552_v36 = vrot.slane %v450_v59, %v155_v37 }
  0x7d   :  { %249 = vmatmul.mubr.f32.gmra.mrb[8].mxu0 %v91_v54  ;;  %2584 = vmatprep.subr.bf16.mxu1 %v3282_v40 }
  0x7e   :  { %2562 = vmatpush1.bf16.msra.mxu0 %v3434_v55  ;;  %254 = vmatprep.mubr.f32.mxu0 %v3281_v0 }
  0x7f   :  { %2564 = vmatprep.subr.bf16.mxu0 %v3437_v56  ;;  %2162 = vmatmul.mubr.f32.gmra.mrb[6].mxu1 %v94_v14 }
  0x80   :  { %2586 = vmatpush3.bf16.msra.mxu1 %v3451_v10  ;;  %2196 = vmatprep.mubr.msk.f32.mxu1 %vm3283_vm0, %v3281_v0 }
  0x81   :  { %255 = vmatmul.mubr.f32.gmra.mrb[10].mxu0 %v92_v1  ;;  %2587 = vmatprep.subr.bf16.mxu1 %v3282_v40 }
  0x82   :  { %2566 = vmatpush1.bf16.msra.mxu0 %v3445_v2  ;;  %260 = vmatprep.mubr.f32.mxu0 %v3281_v0 }
  0x83   :  { %2568 = vmatprep.subr.bf16.mxu0 %v3448_v4 }
  0x84   :  { %2589 = vmatpush3.bf16.msra.mxu1 %v3462_v20 }
  0x85   :  { %261 = vmatmul.mubr.f32.gmra.mrb[12].mxu0 %v93_v3  ;;  %2590 = vmatprep.subr.bf16.mxu1 %v3282_v40  ;;  %v148_v3 = vrot.slane %v143_v38, %v147_v58 }
  0x86   :  { %2570 = vmatpush1.bf16.msra.mxu0 %v3456_v13  ;;  %266 = vmatprep.mubr.f32.mxu0 %v3281_v0 }
  0x87   :  { %2572 = vmatprep.subr.bf16.mxu0 %v3459_v15  ;;  %v3546_v6 = vadd.f32 %v455_v5, %v148_v3 }
  0x88   :  { %2592 = vmatpush3.bf16.msra.mxu1 %v3473_v24 }
  0x89   :  { %267 = vmatmul.mubr.f32.gmra.mrb[14].mxu0 %v94_v14  ;;  %2593 = vmatprep.subr.bf16.mxu1 %v3282_v40  ;;  %v459_v14 = vrot.slane %v450_v59, %v151_v7 }
  0x8a   :  { %2574 = vmatpush1.bf16.msra.mxu0 %v3469_v23  ;;  %538 = vmatprep.mubr.f32.mxu0 %v3281_v0 }
  0x8b   :  { %2600 = vmatprep.subr.bf16.mxu0 %v3396_v9  ;;  %v3549_v21 = vadd.f32 %v459_v14, %v152_v12 }
  0x8c   :  { %2595 = vmatpush3.bf16.msra.mxu1 %v3480_v29 }
  0x8d   :  { %539 = vmatmul.mubr.f32.vlgmr.msra.gmra.mrb[0].mxu0 %v3281_v0  ;;  %2596 = vmatprep.subr.bf16.mxu1 %v3282_v40 }
  0x8e   :  { %2602 = vmatpush1.bf16.msra.mxu0 %v3398_v17  ;;  %705 = vmatprep.mubr.f32.mxu0 %v3281_v0 }
  0x8f   :  { %2604 = vmatprep.subr.bf16.mxu0 %v3401_v18 }
  0x90   :  { %2598 = vmatpush3.bf16.msra.mxu1 %v3488_v32 }
  0x91   :  { %2631 = vmatprep.subr.bf16.mxu1 %v3282_v40 }
  0x92   :  { %2606 = vmatpush1.bf16.msra.mxu0 %v3406_v25 }
  0x93   :  { %2608 = vmatprep.subr.bf16.mxu0 %v3409_v26  ;;  %2197 = vmatmul.mubr.f32.vlgmr.msra.gmra.mrb[8].mxu1 %v3281_v0 }
  0x94   :  { %2633 = vmatpush3.bf16.msra.mxu1 %v3419_v41  ;;  %2231 = vmatprep.mubr.msk.f32.mxu1 %vm3283_vm0, %v3281_v0 }
  0x95   :  { %2634 = vmatprep.subr.bf16.mxu1 %v3282_v40 }
  0x96   :  { %2610 = vmatpush1.bf16.msra.mxu0 %v3413_v34 }
  0x97   :  { %2612 = vmatprep.subr.bf16.mxu0 %v3416_v35 }
  0x98   :  { %2636 = vmatpush3.bf16.msra.mxu1 %v3429_v51 }
  0x99   :  { %2637 = vmatprep.subr.bf16.mxu1 %v3282_v40 }
  0x9a   :  { %2614 = vmatpush1.bf16.msra.mxu0 %v3423_v45 }
  0x9b   :  { %2616 = vmatprep.subr.bf16.mxu0 %v3426_v46 }
  0x9c   :  { %2639 = vmatpush3.bf16.msra.mxu1 %v3440_v61 }
  0x9d   :  { %2640 = vmatprep.subr.bf16.mxu1 %v3282_v40 }
  0x9e   :  { %2618 = vmatpush1.bf16.msra.mxu0 %v3434_v55 }
  0x9f   :  { %2620 = vmatprep.subr.bf16.mxu0 %v3437_v56 }
  0xa0   :  { %2642 = vmatpush3.bf16.msra.mxu1 %v3451_v10 }
  0xa1   :  { %2643 = vmatprep.subr.bf16.mxu1 %v3282_v40 }
  0xa2   :  { %2622 = vmatpush1.bf16.msra.mxu0 %v3445_v2 }
  0xa3   :  { %2624 = vmatprep.subr.bf16.mxu0 %v3448_v4 }
  0xa4   :  { %2645 = vmatpush3.bf16.msra.mxu1 %v3462_v20 }
  0xa5   :  { %2646 = vmatprep.subr.bf16.mxu1 %v3282_v40 }
  0xa6   :  { %2626 = vmatpush1.bf16.msra.mxu0 %v3456_v13 }
  0xa7   :  { %2628 = vmatprep.subr.bf16.mxu0 %v3459_v15 }
  0xa8   :  { %2648 = vmatpush3.bf16.msra.mxu1 %v3473_v24 }
  0xa9   :  { %2649 = vmatprep.subr.bf16.mxu1 %v3282_v40 }
  0xaa   :  { %2630 = vmatpush1.bf16.msra.mxu0 %v3469_v23 }
  0xab   :  { %2656 = vmatprep.subr.bf16.mxu0 %v3396_v9 }
  0xac   :  { %2651 = vmatpush3.bf16.msra.mxu1 %v3480_v29 }
  0xad   :  { %2652 = vmatprep.subr.bf16.mxu1 %v3282_v40 }
  0xb0   :  { %2654 = vmatpush3.bf16.msra.mxu1 %v3488_v32 }
  0xb1   :  { %2687 = vmatprep.subr.bf16.mxu1 %v3282_v40 }
 0x146   :  { %v2154_v42 = vpop.f32.mrb[0].mxu1 }
 0x147   :  { %v3529_v43 = vadd.f32 %v2154_v42, %v156_v39  ;;  %v339_v44 = vpop.f32.mrb[1].mxu1 }
 0x14a   :  { %v2157_v47 = vpop.f32.mrb[2].mxu1 }
 0x14b   :  { %v3531_v48 = vadd.f32 %v2157_v47, %v156_v39  ;;  %v349_v49 = vpop.f32.mrb[3].mxu1 }
 0x14c   :  { %v3533_v50 = vadd.f32 %v349_v49, %v156_v39  ;;  %v340_v49 = vadd.f32 %v339_v44, %v156_v39 }
 0x14e   :  { %v2160_v52 = vpop.f32.mrb[4].mxu1 }
 0x14f   :  { %v3535_v53 = vadd.f32 %v2160_v52, %v156_v39  ;;  %v359_v54 = vpop.f32.mrb[5].mxu1 }
 0x150   :  { %v3537_v57 = vadd.f32 %v359_v54, %v156_v39 }
 0x152   :  { %v2163_v60 = vpop.f32.mrb[6].mxu1 }
 0x153   :  { %v3542_v62 = vadd.f32 %v2163_v60, %v156_v39  ;;  %v369_v63 = vpop.f32.mrb[7].mxu1 }
 0x154   :  { %v3544_v1 = vadd.f32 %v369_v63, %v156_v39 }
 0x160   :  { %v540_v8 = vpop.f32.mrb[0].mxu0 }
 0x161   :  { %v3016_v11 = vadd.f32 %v3546_v6, %v540_v8  ;;  %v542_v16 = vpop.f32.mrb[1].mxu0 }
 0x162   :  { %v3018_v22 = vadd.f32 %v3549_v21, %v542_v16 }
 0x163   :  { %v1926_v19 = vmul.f32 -1.442695, %v3016_v11 }
 0x164   :  { %v1927_v30 = vmul.f32 -1.442695, %v3018_v22 }
 0x165   :  { %3075 = vpow2.f32 %v1926_v19 }
 0x166   :  { %v611_v27 = vpop.f32.mrb[8].mxu1  ;;  %3077 = vpow2.f32 %v1927_v30 }
 0x167   :  { %v2198_v28 = vpop.f32.mrb[9].mxu1  ;;  %v612_v42 = vadd.f32 %v611_v27, %v3552_v36 }
 0x16f   :  { %v3076_v31 = vpop.eup %3075 }
 0x170   :  { %v619_v33 = vadd.f32 1.0, %v3076_v31  ;;  %v3078_v38 = vpop.eup %3077 }
 0x171   :  { %v626_v54 = vadd.f32 1.0, %v3078_v38 }
 0x172   :  { %3079 = vrcp.f32 %v619_v33 }
 0x17c   :  { %v3080_v47 = vpop.eup %3079 }
 0x17d   :  { %v629_v52 = vmul.f32 %v3080_v47, %v612_v42 }
 0x17f   :  { %v630_v58 = vadd.f32 %v629_v52, %v340_v49 }
 0x181   :  { %3081 = vtanh.f32 %v630_v58 }
 0x182   :  { %3083 = vrcp.f32 %v626_v54 }
 0x18b   :  { %v3082_v60 = vpop.eup %3081 }
 0x18c   :  { %v632_v63 = vsub.f32 0.0, %v3082_v60  ;;  %v3084_v3 = vpop.eup %3083 }
 0x18e   :  { %v633_v5 = vmul.f32 %v3084_v3, %v632_v63 }
 0x190   :  { %v634_v7 = vadd.f32 %v3082_v60, %v633_v5 }
 0x192   :  { %706 = vmatmul.mubr.f32.vlgmr.msra.gmra.mrb[2].mxu0 %v634_v7  ;;  %2232 = vmatmul.mubr.f32.vlgmr.msra.gmra.mrb[10].mxu1 %v634_v7 }
 0x193   :  { %2658 = vmatpush1.bf16.msra.mxu0 %v3398_v17  ;;  %2689 = vmatpush3.bf16.msra.mxu1 %v3419_v41 }
 0x194   :  { %2660 = vmatprep.subr.bf16.mxu0 %v3401_v18  ;;  %2690 = vmatprep.subr.bf16.mxu1 %v3282_v40 }
 0x195   :  { %872 = vmatprep.mubr.f32.mxu0 %v3281_v0  ;;  %2266 = vmatprep.mubr.msk.f32.mxu1 %vm3283_vm0, %v3281_v0 }
 0x197   :  { %2662 = vmatpush1.bf16.msra.mxu0 %v3406_v25  ;;  %2692 = vmatpush3.bf16.msra.mxu1 %v3429_v51 }
 0x198   :  { %2664 = vmatprep.subr.bf16.mxu0 %v3409_v26  ;;  %2693 = vmatprep.subr.bf16.mxu1 %v3282_v40 }
 0x19b   :  { %2666 = vmatpush1.bf16.msra.mxu0 %v3413_v34  ;;  %2695 = vmatpush3.bf16.msra.mxu1 %v3440_v61 }
 0x19c   :  { %2668 = vmatprep.subr.bf16.mxu0 %v3416_v35  ;;  %2696 = vmatprep.subr.bf16.mxu1 %v3282_v40 }
 0x19f   :  { %2670 = vmatpush1.bf16.msra.mxu0 %v3423_v45  ;;  %2698 = vmatpush3.bf16.msra.mxu1 %v3451_v10 }
 0x1a0   :  { %2672 = vmatprep.subr.bf16.mxu0 %v3426_v46  ;;  %2699 = vmatprep.subr.bf16.mxu1 %v3282_v40 }
 0x1a3   :  { %2674 = vmatpush1.bf16.msra.mxu0 %v3434_v55  ;;  %2701 = vmatpush3.bf16.msra.mxu1 %v3462_v20 }
 0x1a4   :  { %2676 = vmatprep.subr.bf16.mxu0 %v3437_v56  ;;  %2702 = vmatprep.subr.bf16.mxu1 %v3282_v40 }
 0x1a7   :  { %2678 = vmatpush1.bf16.msra.mxu0 %v3445_v2  ;;  %2704 = vmatpush3.bf16.msra.mxu1 %v3473_v24 }
 0x1a8   :  { %2680 = vmatprep.subr.bf16.mxu0 %v3448_v4  ;;  %2705 = vmatprep.subr.bf16.mxu1 %v3282_v40 }
 0x1ab   :  { %2682 = vmatpush1.bf16.msra.mxu0 %v3456_v13  ;;  %2707 = vmatpush3.bf16.msra.mxu1 %v3480_v29 }
 0x1ac   :  { %2684 = vmatprep.subr.bf16.mxu0 %v3459_v15  ;;  %2708 = vmatprep.subr.bf16.mxu1 %v3282_v40 }
 0x1af   :  { %2686 = vmatpush1.bf16.msra.mxu0 %v3469_v23  ;;  %2710 = vmatpush3.bf16.msra.mxu1 %v3488_v32 }
 0x1b0   :  { %2712 = vmatprep.subr.bf16.mxu0 %v3396_v9  ;;  %2743 = vmatprep.subr.bf16.mxu1 %v3282_v40 }
 0x265   :  { %v707_v37 = vpop.f32.mrb[2].mxu0  ;;  %v778_v39 = vpop.f32.mrb[10].mxu1 }
 0x266   :  { %v3020_v44 = vadd.f32 %v3546_v6, %v707_v37  ;;  %v709_v59 = vpop.f32.mrb[3].mxu0  ;;  %v2233_v8 = vpop.f32.mrb[11].mxu1  ;;  %v779_v27 = vadd.f32 %v778_v39, %v3552_v36 }
 0x267   :  { %v3022_v12 = vadd.f32 %v3549_v21, %v709_v59 }
 0x268   :  { %v1928_v11 = vmul.f32 -1.442695, %v3020_v44 }
 0x269   :  { %v1929_v14 = vmul.f32 -1.442695, %v3022_v12 }
 0x26a   :  { %3085 = vpow2.f32 %v1928_v11 }
 0x26b   :  { %3087 = vpow2.f32 %v1929_v14 }
 0x274   :  { %v3086_v16 = vpop.eup %3085 }
 0x275   :  { %v786_v19 = vadd.f32 1.0, %v3086_v16  ;;  %v3088_v22 = vpop.eup %3087 }
 0x276   :  { %v793_v33 = vadd.f32 1.0, %v3088_v22 }
 0x277   :  { %3089 = vrcp.f32 %v786_v19 }
 0x281   :  { %v3090_v28 = vpop.eup %3089 }
 0x282   :  { %v796_v30 = vmul.f32 %v3090_v28, %v779_v27 }
 0x284   :  { %v797_v31 = vadd.f32 %v796_v30, %v3529_v43 }
 0x286   :  { %3091 = vtanh.f32 %v797_v31 }
 0x287   :  { %3093 = vrcp.f32 %v793_v33 }
 0x290   :  { %v3092_v42 = vpop.eup %3091 }
 0x291   :  { %v799_v38 = vsub.f32 %v634_v7, %v3092_v42  ;;  %v3094_v47 = vpop.eup %3093 }
 0x293   :  { %v800_v49 = vmul.f32 %v3094_v47, %v799_v38 }
 0x295   :  { %v801_v52 = vadd.f32 %v3092_v42, %v800_v49 }
 0x297   :  { %873 = vmatmul.mubr.f32.vlgmr.msra.gmra.mrb[4].mxu0 %v801_v52  ;;  %2267 = vmatmul.mubr.f32.vlgmr.msra.gmra.mrb[12].mxu1 %v801_v52 }
 0x298   :  { %2714 = vmatpush1.bf16.msra.mxu0 %v3398_v17  ;;  %2745 = vmatpush3.bf16.msra.mxu1 %v3419_v41 }
 0x299   :  { %2716 = vmatprep.subr.bf16.mxu0 %v3401_v18  ;;  %2746 = vmatprep.subr.bf16.mxu1 %v3282_v40 }
 0x29a   :  { %1039 = vmatprep.mubr.f32.mxu0 %v3281_v0  ;;  %2301 = vmatprep.mubr.msk.f32.mxu1 %vm3283_vm0, %v3281_v0 }
 0x29c   :  { %2718 = vmatpush1.bf16.msra.mxu0 %v3406_v25  ;;  %2748 = vmatpush3.bf16.msra.mxu1 %v3429_v51 }
 0x29d   :  { %2720 = vmatprep.subr.bf16.mxu0 %v3409_v26  ;;  %2749 = vmatprep.subr.bf16.mxu1 %v3282_v40 }
 0x2a0   :  { %2722 = vmatpush1.bf16.msra.mxu0 %v3413_v34  ;;  %2751 = vmatpush3.bf16.msra.mxu1 %v3440_v61 }
 0x2a1   :  { %2724 = vmatprep.subr.bf16.mxu0 %v3416_v35  ;;  %2752 = vmatprep.subr.bf16.mxu1 %v3282_v40 }
 0x2a4   :  { %2726 = vmatpush1.bf16.msra.mxu0 %v3423_v45  ;;  %2754 = vmatpush3.bf16.msra.mxu1 %v3451_v10 }
 0x2a5   :  { %2728 = vmatprep.subr.bf16.mxu0 %v3426_v46  ;;  %2755 = vmatprep.subr.bf16.mxu1 %v3282_v40 }
 0x2a8   :  { %2730 = vmatpush1.bf16.msra.mxu0 %v3434_v55  ;;  %2757 = vmatpush3.bf16.msra.mxu1 %v3462_v20 }
 0x2a9   :  { %2732 = vmatprep.subr.bf16.mxu0 %v3437_v56  ;;  %2758 = vmatprep.subr.bf16.mxu1 %v3282_v40 }
 0x2ac   :  { %2734 = vmatpush1.bf16.msra.mxu0 %v3445_v2  ;;  %2760 = vmatpush3.bf16.msra.mxu1 %v3473_v24 }
 0x2ad   :  { %2736 = vmatprep.subr.bf16.mxu0 %v3448_v4  ;;  %2761 = vmatprep.subr.bf16.mxu1 %v3282_v40 }
 0x2b0   :  { %2738 = vmatpush1.bf16.msra.mxu0 %v3456_v13  ;;  %2763 = vmatpush3.bf16.msra.mxu1 %v3480_v29 }
 0x2b1   :  { %2740 = vmatprep.subr.bf16.mxu0 %v3459_v15  ;;  %2764 = vmatprep.subr.bf16.mxu1 %v3282_v40 }
 0x2b4   :  { %2742 = vmatpush1.bf16.msra.mxu0 %v3469_v23  ;;  %2766 = vmatpush3.bf16.msra.mxu1 %v3488_v32 }
 0x2b5   :  { %2768 = vmatprep.subr.bf16.mxu0 %v3396_v9  ;;  %2799 = vmatprep.subr.bf16.mxu1 %v3282_v40 }
 0x36a   :  { %v874_v43 = vpop.f32.mrb[4].mxu0  ;;  %v945_v54 = vpop.f32.mrb[12].mxu1 }
 0x36b   :  { %v3024_v58 = vadd.f32 %v3546_v6, %v874_v43  ;;  %v876_v60 = vpop.f32.mrb[5].mxu0  ;;  %v2268_v63 = vpop.f32.mrb[13].mxu1  ;;  %v946_v59 = vadd.f32 %v945_v54, %v3552_v36 }
 0x36c   :  { %v3026_v5 = vadd.f32 %v3549_v21, %v876_v60 }
 0x36d   :  { %v1930_v3 = vmul.f32 -1.442695, %v3024_v58 }
 0x36e   :  { %v1931_v7 = vmul.f32 -1.442695, %v3026_v5 }
 0x36f   :  { %3095 = vpow2.f32 %v1930_v3 }
 0x370   :  { %3097 = vpow2.f32 %v1931_v7 }
 0x379   :  { %v3096_v37 = vpop.eup %3095 }
 0x37a   :  { %v953_v39 = vadd.f32 1.0, %v3096_v37  ;;  %v3098_v44 = vpop.eup %3097 }
 0x37b   :  { %v960_v14 = vadd.f32 1.0, %v3098_v44 }
 0x37c   :  { %3099 = vrcp.f32 %v953_v39 }
 0x386   :  { %v3100_v8 = vpop.eup %3099 }
 0x387   :  { %v963_v11 = vmul.f32 %v3100_v8, %v946_v59 }
 0x389   :  { %v964_v12 = vadd.f32 %v963_v11, %v3533_v50 }
 0x38b   :  { %3101 = vtanh.f32 %v964_v12 }
 0x38c   :  { %3103 = vrcp.f32 %v960_v14 }
 0x395   :  { %v3102_v16 = vpop.eup %3101 }
 0x396   :  { %v966_v19 = vsub.f32 %v801_v52, %v3102_v16  ;;  %v3104_v22 = vpop.eup %3103 }
 0x398   :  { %v967_v27 = vmul.f32 %v3104_v22, %v966_v19 }
 0x39a   :  { %v968_v28 = vadd.f32 %v3102_v16, %v967_v27 }
 0x39c   :  { %1040 = vmatmul.mubr.f32.vlgmr.msra.gmra.mrb[6].mxu0 %v968_v28  ;;  %2302 = vmatmul.mubr.f32.vlgmr.msra.gmra.mrb[14].mxu1 %v968_v28 }
 0x39d   :  { %2770 = vmatpush1.bf16.msra.mxu0 %v3398_v17  ;;  %2801 = vmatpush3.bf16.msra.mxu1 %v3419_v41 }
 0x39e   :  { %2772 = vmatprep.subr.bf16.mxu0 %v3401_v18  ;;  %2802 = vmatprep.subr.bf16.mxu1 %v3282_v40 }
 0x39f   :  { %1206 = vmatprep.mubr.f32.mxu0 %v3281_v0  ;;  %2336 = vmatprep.mubr.msk.f32.mxu1 %vm3283_vm0, %v3281_v0 }
 0x3a1   :  { %2774 = vmatpush1.bf16.msra.mxu0 %v3406_v25  ;;  %2804 = vmatpush3.bf16.msra.mxu1 %v3429_v51 }
 0x3a2   :  { %2776 = vmatprep.subr.bf16.mxu0 %v3409_v26  ;;  %2805 = vmatprep.subr.bf16.mxu1 %v3282_v40 }
 0x3a5   :  { %2778 = vmatpush1.bf16.msra.mxu0 %v3413_v34  ;;  %2807 = vmatpush3.bf16.msra.mxu1 %v3440_v61 }
 0x3a6   :  { %2780 = vmatprep.subr.bf16.mxu0 %v3416_v35  ;;  %2808 = vmatprep.subr.bf16.mxu1 %v3282_v40 }
 0x3a9   :  { %2782 = vmatpush1.bf16.msra.mxu0 %v3423_v45  ;;  %2810 = vmatpush3.bf16.msra.mxu1 %v3451_v10 }
 0x3aa   :  { %2784 = vmatprep.subr.bf16.mxu0 %v3426_v46  ;;  %2811 = vmatprep.subr.bf16.mxu1 %v3282_v40 }
 0x3ad   :  { %2786 = vmatpush1.bf16.msra.mxu0 %v3434_v55  ;;  %2813 = vmatpush3.bf16.msra.mxu1 %v3462_v20 }
 0x3ae   :  { %2788 = vmatprep.subr.bf16.mxu0 %v3437_v56  ;;  %2814 = vmatprep.subr.bf16.mxu1 %v3282_v40 }
 0x3b1   :  { %2790 = vmatpush1.bf16.msra.mxu0 %v3445_v2  ;;  %2816 = vmatpush3.bf16.msra.mxu1 %v3473_v24 }
 0x3b2   :  { %2792 = vmatprep.subr.bf16.mxu0 %v3448_v4  ;;  %2817 = vmatprep.subr.bf16.mxu1 %v3282_v40 }
 0x3b5   :  { %2794 = vmatpush1.bf16.msra.mxu0 %v3456_v13  ;;  %2819 = vmatpush3.bf16.msra.mxu1 %v3480_v29 }
 0x3b6   :  { %2796 = vmatprep.subr.bf16.mxu0 %v3459_v15  ;;  %2820 = vmatprep.subr.bf16.mxu1 %v3282_v40 }
 0x3b9   :  { %2798 = vmatpush1.bf16.msra.mxu0 %v3469_v23  ;;  %2822 = vmatpush3.bf16.msra.mxu1 %v3488_v32 }
 0x3ba   :  { %2824 = vmatprep.subr.bf16.mxu0 %v3396_v9  ;;  %2855 = vmatprep.subr.bf16.mxu1 %v3282_v40 }
 0x46f   :  { %v1041_v50 = vpop.f32.mrb[6].mxu0  ;;  %v1112_v30 = vpop.f32.mrb[14].mxu1 }
 0x470   :  { %v3028_v31 = vadd.f32 %v3546_v6, %v1041_v50  ;;  %v1043_v33 = vpop.f32.mrb[7].mxu0  ;;  %v2303_v42 = vpop.f32.mrb[15].mxu1  ;;  %v1113_v58 = vadd.f32 %v1112_v30, %v3552_v36 }
 0x471   :  { %v3030_v47 = vadd.f32 %v3549_v21, %v1043_v33 }
 0x472   :  { %v1932_v38 = vmul.f32 -1.442695, %v3028_v31 }
 0x473   :  { %v1933_v49 = vmul.f32 -1.442695, %v3030_v47 }
 0x474   :  { %3105 = vpow2.f32 %v1932_v38 }
 0x475   :  { %3107 = vpow2.f32 %v1933_v49 }
 0x47e   :  { %v3106_v52 = vpop.eup %3105 }
 0x47f   :  { %v1120_v43 = vadd.f32 1.0, %v3106_v52  ;;  %v3108_v54 = vpop.eup %3107 }
 0x480   :  { %v1127_v5 = vadd.f32 1.0, %v3108_v54 }
 0x481   :  { %3109 = vrcp.f32 %v1120_v43 }
 0x48b   :  { %v3110_v60 = vpop.eup %3109 }
 0x48c   :  { %v1130_v63 = vmul.f32 %v3110_v60, %v1113_v58 }
 0x48e   :  { %v1131_v3 = vadd.f32 %v1130_v63, %v3531_v48 }
 0x490   :  { %3111 = vtanh.f32 %v1131_v3 }
 0x491   :  { %3113 = vrcp.f32 %v1127_v5 }
 0x49a   :  { %v3112_v7 = vpop.eup %3111 }
 0x49b   :  { %v1133_v37 = vsub.f32 %v968_v28, %v3112_v7  ;;  %v3114_v39 = vpop.eup %3113 }
 0x49d   :  { %v1134_v44 = vmul.f32 %v3114_v39, %v1133_v37 }
 0x49f   :  { %v1135_v59 = vadd.f32 %v3112_v7, %v1134_v44 }
 0x4a1   :  { %1207 = vmatmul.mubr.f32.vlgmr.msra.gmra.mrb[8].mxu0 %v1135_v59  ;;  %2337 = vmatmul.mubr.f32.vlgmr.msra.gmra.mrb[16].mxu1 %v1135_v59 }
 0x4a2   :  { %2826 = vmatpush1.bf16.msra.mxu0 %v3398_v17  ;;  %2857 = vmatpush3.bf16.msra.mxu1 %v3419_v41 }
 0x4a3   :  { %2828 = vmatprep.subr.bf16.mxu0 %v3401_v18  ;;  %2858 = vmatprep.subr.bf16.mxu1 %v3282_v40 }
 0x4a4   :  { %1373 = vmatprep.mubr.f32.mxu0 %v3281_v0  ;;  %2371 = vmatprep.mubr.msk.f32.mxu1 %vm3283_vm0, %v3281_v0 }
 0x4a6   :  { %2830 = vmatpush1.bf16.msra.mxu0 %v3406_v25  ;;  %2860 = vmatpush3.bf16.msra.mxu1 %v3429_v51 }
 0x4a7   :  { %2832 = vmatprep.subr.bf16.mxu0 %v3409_v26  ;;  %2861 = vmatprep.subr.bf16.mxu1 %v3282_v40 }
 0x4aa   :  { %2834 = vmatpush1.bf16.msra.mxu0 %v3413_v34  ;;  %2863 = vmatpush3.bf16.msra.mxu1 %v3440_v61 }
 0x4ab   :  { %2836 = vmatprep.subr.bf16.mxu0 %v3416_v35  ;;  %2864 = vmatprep.subr.bf16.mxu1 %v3282_v40 }
 0x4ae   :  { %2838 = vmatpush1.bf16.msra.mxu0 %v3423_v45  ;;  %2866 = vmatpush3.bf16.msra.mxu1 %v3451_v10 }
 0x4af   :  { %2840 = vmatprep.subr.bf16.mxu0 %v3426_v46  ;;  %2867 = vmatprep.subr.bf16.mxu1 %v3282_v40 }
 0x4b2   :  { %2842 = vmatpush1.bf16.msra.mxu0 %v3434_v55  ;;  %2869 = vmatpush3.bf16.msra.mxu1 %v3462_v20 }
 0x4b3   :  { %2844 = vmatprep.subr.bf16.mxu0 %v3437_v56  ;;  %2870 = vmatprep.subr.bf16.mxu1 %v3282_v40 }
 0x4b6   :  { %2846 = vmatpush1.bf16.msra.mxu0 %v3445_v2  ;;  %2872 = vmatpush3.bf16.msra.mxu1 %v3473_v24 }
 0x4b7   :  { %2848 = vmatprep.subr.bf16.mxu0 %v3448_v4  ;;  %2873 = vmatprep.subr.bf16.mxu1 %v3282_v40 }
 0x4ba   :  { %2850 = vmatpush1.bf16.msra.mxu0 %v3456_v13  ;;  %2875 = vmatpush3.bf16.msra.mxu1 %v3480_v29 }
 0x4bb   :  { %2852 = vmatprep.subr.bf16.mxu0 %v3459_v15  ;;  %2876 = vmatprep.subr.bf16.mxu1 %v3282_v40 }
 0x4be   :  { %2854 = vmatpush1.bf16.msra.mxu0 %v3469_v23  ;;  %2878 = vmatpush3.bf16.msra.mxu1 %v3488_v32 }
 0x4bf   :  { %2880 = vmatprep.subr.bf16.mxu0 %v3396_v9  ;;  %2911 = vmatprep.subr.bf16.mxu1 %v3282_v40 }
 0x574   :  { %v1208_v48 = vpop.f32.mrb[8].mxu0  ;;  %v1279_v8 = vpop.f32.mrb[16].mxu1 }
 0x575   :  { %v3032_v11 = vadd.f32 %v3546_v6, %v1208_v48  ;;  %v1210_v12 = vpop.f32.mrb[9].mxu0  ;;  %v2338_v14 = vpop.f32.mrb[17].mxu1  ;;  %v1280_v30 = vadd.f32 %v1279_v8, %v3552_v36 }
 0x576   :  { %v3034_v19 = vadd.f32 %v3549_v21, %v1210_v12 }
 0x577   :  { %v1934_v16 = vmul.f32 -1.442695, %v3032_v11 }
 0x578   :  { %v1935_v22 = vmul.f32 -1.442695, %v3034_v19 }
 0x579   :  { %3115 = vpow2.f32 %v1934_v16 }
 0x57a   :  { %3117 = vpow2.f32 %v1935_v22 }
 0x583   :  { %v3116_v27 = vpop.eup %3115 }
 0x584   :  { %v1287_v28 = vadd.f32 1.0, %v3116_v27  ;;  %v3118_v50 = vpop.eup %3117 }
 0x585   :  { %v1294_v38 = vadd.f32 1.0, %v3118_v50 }
 0x586   :  { %3119 = vrcp.f32 %v1287_v28  ;;  %v1811_v28 = vld [vmem:[#allocation10 + $0x18] sm:$0xff] }
 0x590   :  { %v3120_v31 = vpop.eup %3119 }
 0x591   :  { %v1297_v33 = vmul.f32 %v3120_v31, %v1280_v30  ;;  %v1812_v30 = vld [vmem:[#allocation10 + $0x20] sm:$0xff]  ;;  %v1813_v31 = vld [vmem:[#allocation10 + $0x28] sm:$0xff] }
 0x593   :  { %v1298_v42 = vadd.f32 %v1297_v33, %v3537_v57  ;;  %v2998_v33 = vpack.c.bf16 %v1813_v31, %v1812_v30 }
 0x595   :  { %3121 = vtanh.f32 %v1298_v42  ;;  %v1814_v42 = vld [vmem:[#allocation10 + $0x30] sm:$0xff] }
 0x596   :  { %3123 = vrcp.f32 %v1294_v38 }
 0x59f   :  { %v3122_v47 = vpop.eup %3121 }
 0x5a0   :  { %v1300_v49 = vsub.f32 %v1135_v59, %v3122_v47  ;;  %v3124_v52 = vpop.eup %3123 }
 0x5a2   :  { %v1301_v43 = vmul.f32 %v3124_v52, %v1300_v49  ;;  %v1817_v49 = vld [vmem:[#allocation10 + $0x48] sm:$0xff] }
 0x5a4   :  { %v1302_v54 = vadd.f32 %v3122_v47, %v1301_v43  ;;  %v1816_v47 = vld [vmem:[#allocation10 + $0x40] sm:$0xff]  ;;  %v1818_v43 = vld [vmem:[#allocation10 + $0x50] sm:$0xff] }
 0x5a5   :  { %v3004_v52 = vpack.c.bf16 %v1817_v49, %v1816_v47 }
 0x5a6   :  { %1374 = vmatmul.mubr.f32.vlgmr.msra.gmra.mrb[10].mxu0 %v1302_v54  ;;  %2372 = vmatmul.mubr.f32.vlgmr.msra.gmra.mrb[18].mxu1 %v1302_v54 }
 0x5a7   :  { %2882 = vmatpush1.bf16.msra.mxu0 %v3398_v17  ;;  %2913 = vmatpush3.bf16.msra.mxu1 %v3419_v41 }
 0x5a8   :  { %2884 = vmatprep.subr.bf16.mxu0 %v3401_v18  ;;  %2914 = vmatprep.subr.bf16.mxu1 %v3282_v40 }
 0x5a9   :  { %1540 = vmatprep.mubr.f32.mxu0 %v3281_v0  ;;  %2406 = vmatprep.mubr.msk.f32.mxu1 %vm3283_vm0, %v3281_v0 }
 0x5ab   :  { %2886 = vmatpush1.bf16.msra.mxu0 %v3406_v25  ;;  %2916 = vmatpush3.bf16.msra.mxu1 %v3429_v51 }
 0x5ac   :  { %2888 = vmatprep.subr.bf16.mxu0 %v3409_v26  ;;  %2917 = vmatprep.subr.bf16.mxu1 %v3282_v40 }
 0x5af   :  { %2890 = vmatpush1.bf16.msra.mxu0 %v3413_v34  ;;  %2919 = vmatpush3.bf16.msra.mxu1 %v3440_v61 }
 0x5b0   :  { %2892 = vmatprep.subr.bf16.mxu0 %v3416_v35  ;;  %2920 = vmatprep.subr.bf16.mxu1 %v3282_v40 }
 0x5b3   :  { %2894 = vmatpush1.bf16.msra.mxu0 %v3423_v45  ;;  %2922 = vmatpush3.bf16.msra.mxu1 %v3451_v10 }
 0x5b4   :  { %2896 = vmatprep.subr.bf16.mxu0 %v3426_v46  ;;  %2923 = vmatprep.subr.bf16.mxu1 %v3282_v40 }
 0x5b7   :  { %2898 = vmatpush1.bf16.msra.mxu0 %v3434_v55  ;;  %2925 = vmatpush3.bf16.msra.mxu1 %v3462_v20 }
 0x5b8   :  { %2900 = vmatprep.subr.bf16.mxu0 %v3437_v56  ;;  %2926 = vmatprep.subr.bf16.mxu1 %v3282_v40 }
 0x5bb   :  { %2902 = vmatpush1.bf16.msra.mxu0 %v3445_v2  ;;  %2928 = vmatpush3.bf16.msra.mxu1 %v3473_v24 }
 0x5bc   :  { %2904 = vmatprep.subr.bf16.mxu0 %v3448_v4  ;;  %2929 = vmatprep.subr.bf16.mxu1 %v3282_v40 }
 0x5bf   :  { %2906 = vmatpush1.bf16.msra.mxu0 %v3456_v13  ;;  %2931 = vmatpush3.bf16.msra.mxu1 %v3480_v29 }
 0x5c0   :  { %2908 = vmatprep.subr.bf16.mxu0 %v3459_v15  ;;  %2932 = vmatprep.subr.bf16.mxu1 %v3282_v40 }
 0x5c3   :  { %2910 = vmatpush1.bf16.msra.mxu0 %v3469_v23  ;;  %2934 = vmatpush3.bf16.msra.mxu1 %v3488_v32 }
 0x5c4   :  { %2936 = vmatprep.subr.bf16.mxu0 %v3396_v9  ;;  %2967 = vmatprep.subr.bf16.mxu1 %v3282_v40 }
 0x679   :  { %v1375_v57 = vpop.f32.mrb[10].mxu0  ;;  %v1446_v58 = vpop.f32.mrb[18].mxu1 }
 0x67a   :  { %v3036_v60 = vadd.f32 %v3546_v6, %v1375_v57  ;;  %v1377_v63 = vpop.f32.mrb[11].mxu0  ;;  %v2373_v3 = vpop.f32.mrb[19].mxu1  ;;  %v1447_v9 = vadd.f32 %v1446_v58, %v3552_v36  ;;  %v1820_v58 = vld [vmem:[#allocation10 + $0x60] sm:$0xff] }
 0x67b   :  { %v3038_v7 = vadd.f32 %v3549_v21, %v1377_v63  ;;  %v1822_v3 = vld [vmem:[#allocation10 + $0x70] sm:$0xff] }
 0x67c   :  { %v1936_v5 = vmul.f32 -1.442695, %v3036_v60  ;;  %v1821_v60 = vld [vmem:[#allocation10 + $0x68] sm:$0xff] }
 0x67d   :  { %v1937_v37 = vmul.f32 -1.442695, %v3038_v7  ;;  %v3010_v63 = vpack.c.bf16 %v1821_v60, %v1820_v58 }
 0x67e   :  { %3125 = vpow2.f32 %v1936_v5  ;;  %v1823_v5 = vld [vmem:[#allocation10 + $0x78] sm:$0xff] }
 0x67f   :  { %3127 = vpow2.f32 %v1937_v37  ;;  %v3013_v7 = vpack.c.bf16 %v1823_v5, %v1822_v3 }
 0x688   :  { %v3126_v39 = vpop.eup %3125 }
 0x689   :  { %v1454_v44 = vadd.f32 1.0, %v3126_v39  ;;  %v3128_v59 = vpop.eup %3127 }
 0x68a   :  { %v1461_v12 = vadd.f32 1.0, %v3128_v59 }
 0x68b   :  { %3129 = vrcp.f32 %v1454_v44 }
 0x695   :  { %v3130_v48 = vpop.eup %3129 }
 0x696   :  { %v1464_v8 = vmul.f32 %v3130_v48, %v1447_v9 }
 0x698   :  { %v1465_v11 = vadd.f32 %v1464_v8, %v3535_v53 }
 0x69a   :  { %3131 = vtanh.f32 %v1465_v11 }
 0x69b   :  { %3133 = vrcp.f32 %v1461_v12 }
 0x6a4   :  { %v3132_v14 = vpop.eup %3131 }
 0x6a5   :  { %v1467_v16 = vsub.f32 %v1302_v54, %v3132_v14  ;;  %v3134_v19 = vpop.eup %3133  ;;  %v1819_v54 = vld [vmem:[#allocation10 + $0x58] sm:$0xff] }
 0x6a6   :  { %v3007_v57 = vpack.c.bf16 %v1819_v54, %v1818_v43 }
 0x6a7   :  { %v1468_v22 = vmul.f32 %v3134_v19, %v1467_v16 }
 0x6a9   :  { %v1469_v27 = vadd.f32 %v3132_v14, %v1468_v22 }
 0x6ab   :  { %1541 = vmatmul.mubr.f32.vlgmr.msra.gmra.mrb[12].mxu0 %v1469_v27  ;;  %2407 = vmatmul.mubr.f32.vlgmr.msra.gmra.mrb[20].mxu1 %v1469_v27 }
 0x6ac   :  { %2938 = vmatpush1.bf16.msra.mxu0 %v3398_v17  ;;  %2969 = vmatpush3.bf16.msra.mxu1 %v3419_v41 }
 0x6ad   :  { %2940 = vmatprep.subr.bf16.mxu0 %v3401_v18  ;;  %2970 = vmatprep.subr.bf16.mxu1 %v3282_v40 }
 0x6ae   :  { %1707 = vmatprep.mubr.f32.mxu0 %v3281_v0  ;;  %2441 = vmatprep.mubr.msk.f32.mxu1 %vm3283_vm0, %v3281_v0 }
 0x6b0   :  { %2942 = vmatpush1.bf16.msra.mxu0 %v3406_v25  ;;  %2972 = vmatpush3.bf16.msra.mxu1 %v3429_v51 }
 0x6b1   :  { %2944 = vmatprep.subr.bf16.mxu0 %v3409_v26  ;;  %2973 = vmatprep.subr.bf16.mxu1 %v3282_v40 }
 0x6b4   :  { %2946 = vmatpush1.bf16.msra.mxu0 %v3413_v34  ;;  %2975 = vmatpush3.bf16.msra.mxu1 %v3440_v61 }
 0x6b5   :  { %2948 = vmatprep.subr.bf16.mxu0 %v3416_v35  ;;  %2976 = vmatprep.subr.bf16.mxu1 %v3282_v40 }
 0x6b8   :  { %2950 = vmatpush1.bf16.msra.mxu0 %v3423_v45  ;;  %2978 = vmatpush3.bf16.msra.mxu1 %v3451_v10 }
 0x6b9   :  { %2952 = vmatprep.subr.bf16.mxu0 %v3426_v46  ;;  %2979 = vmatprep.subr.bf16.mxu1 %v3282_v40 }
 0x6bc   :  { %2954 = vmatpush1.bf16.msra.mxu0 %v3434_v55  ;;  %2981 = vmatpush3.bf16.msra.mxu1 %v3462_v20 }
 0x6bd   :  { %2956 = vmatprep.subr.bf16.mxu0 %v3437_v56  ;;  %2982 = vmatprep.subr.bf16.mxu1 %v3282_v40 }
 0x6c0   :  { %2958 = vmatpush1.bf16.msra.mxu0 %v3445_v2  ;;  %2984 = vmatpush3.bf16.msra.mxu1 %v3473_v24 }
 0x6c1   :  { %2960 = vmatprep.subr.bf16.mxu0 %v3448_v4  ;;  %2985 = vmatprep.subr.bf16.mxu1 %v3282_v40 }
 0x6c4   :  { %2962 = vmatpush1.bf16.msra.mxu0 %v3456_v13  ;;  %2987 = vmatpush3.bf16.msra.mxu1 %v3480_v29  ;;  %v1808_v29 = vld [vmem:[#allocation10] sm:$0xff] }
 0x6c5   :  { %2964 = vmatprep.subr.bf16.mxu0 %v3459_v15  ;;  %2988 = vmatprep.subr.bf16.mxu1 %v3282_v40 }
 0x6c8   :  { %2966 = vmatpush1.bf16.msra.mxu0 %v3469_v23  ;;  %2990 = vmatpush3.bf16.msra.mxu1 %v3488_v32  ;;  %v1809_v32 = vld [vmem:[#allocation10 + $0x8] sm:$0xff] }
 0x6c9   :  { %2991 = vmatprep.subr.bf16.mxu0 %v3282_v40  ;;  %v2992_v53 = vpack.c.bf16 %v1809_v32, %v1808_v29 }
 0x77e   :  { %v1542_v17 = vpop.f32.mrb[12].mxu0  ;;  %v1613_v18 = vpop.f32.mrb[20].mxu1 }
 0x77f   :  { %v3040_v25 = vadd.f32 %v3546_v6, %v1542_v17  ;;  %v1544_v26 = vpop.f32.mrb[13].mxu0  ;;  %v2408_v34 = vpop.f32.mrb[21].mxu1  ;;  %v1614_v56 = vadd.f32 %v1613_v18, %v3552_v36 }
 0x780   :  { %v3042_v41 = vadd.f32 %v3549_v21, %v1544_v26  ;;  %v1942_v34 = vld [vmem:[%s3827_s6] ss:$0 sm:$0xff] }
 0x781   :  { %v1938_v35 = vmul.f32 -1.442695, %v3040_v25 }
 0x782   :  { %v1939_v45 = vmul.f32 -1.442695, %v3042_v41 }
 0x783   :  { %3135 = vpow2.f32 %v1938_v35 }
 0x784   :  { %3137 = vpow2.f32 %v1939_v45 }
 0x78d   :  { %v3136_v46 = vpop.eup %3135 }
 0x78e   :  { %v1621_v51 = vadd.f32 1.0, %v3136_v46  ;;  %v3138_v55 = vpop.eup %3137 }
 0x78f   :  { %v1628_v10 = vadd.f32 1.0, %v3138_v55 }
 0x790   :  { %3139 = vrcp.f32 %v1621_v51 }
 0x79a   :  { %v3140_v61 = vpop.eup %3139 }
 0x79b   :  { %v1631_v2 = vmul.f32 %v3140_v61, %v1614_v56 }
 0x79d   :  { %v1632_v4 = vadd.f32 %v1631_v2, %v3544_v1  ;;  %v1810_v1 = vld [vmem:[#allocation10 + $0x10] sm:$0xff] }
 0x79e   :  { %v2995_v50 = vpack.c.bf16 %v1811_v28, %v1810_v1 }
 0x79f   :  { %3141 = vtanh.f32 %v1632_v4 }
 0x7a0   :  { %3143 = vrcp.f32 %v1628_v10 }
 0x7a9   :  { %v3142_v13 = vpop.eup %3141 }
 0x7aa   :  { %v1634_v15 = vsub.f32 %v1469_v27, %v3142_v13  ;;  %v3144_v20 = vpop.eup %3143 }
 0x7ac   :  { %v1635_v23 = vmul.f32 %v3144_v20, %v1634_v15 }
 0x7ae   :  { %v3788_v24 = vadd.f32 %v3142_v13, %v1635_v23 }
 0x7b0   :  { %1708 = vmatmul.mubr.f32.vlgmr.msra.gmra.mrb[14].mxu0 %v3788_v24  ;;  %2442 = vmatmul.mubr.f32.vlgmr.msra.gmra.mrb[22].mxu1 %v3788_v24 }
 0x7b1   :  { %2476 = vmatprep.mubr.msk.f32.mxu0 %vm3283_vm0, %v3281_v0  ;;  %2993 = vmatpush3.bf16.msra.mxu0 %v2992_v53  ;;  %v1815_v0 = vld [vmem:[#allocation10 + $0x38] sm:$0xff] }
 0x7b2   :  { %2994 = vmatprep.subr.bf16.mxu0 %v3282_v40  ;;  %v3001_v38 = vpack.c.bf16 %v1815_v0, %v1814_v42 }
 0x7b5   :  { %2996 = vmatpush3.bf16.msra.mxu0 %v2995_v50 }
 0x7b6   :  { %2997 = vmatprep.subr.bf16.mxu0 %v3282_v40 }
 0x7b9   :  { %2999 = vmatpush3.bf16.msra.mxu0 %v2998_v33 }
 0x7ba   :  { %3000 = vmatprep.subr.bf16.mxu0 %v3282_v40 }
 0x7bd   :  { %3002 = vmatpush3.bf16.msra.mxu0 %v3001_v38 }
 0x7be   :  { %3003 = vmatprep.subr.bf16.mxu0 %v3282_v40 }
 0x7c1   :  { %3005 = vmatpush3.bf16.msra.mxu0 %v3004_v52 }
 0x7c2   :  { %3006 = vmatprep.subr.bf16.mxu0 %v3282_v40 }
 0x7c5   :  { %3008 = vmatpush3.bf16.msra.mxu0 %v3007_v57 }
 0x7c6   :  { %3009 = vmatprep.subr.bf16.mxu0 %v3282_v40 }
 0x7c9   :  { %3011 = vmatpush3.bf16.msra.mxu0 %v3010_v63 }
 0x7ca   :  { %3012 = vmatprep.subr.bf16.mxu0 %v3282_v40 }
 0x7cd   :  { %3014 = vmatpush3.bf16.msra.mxu0 %v3013_v7 }
 0x883   :  { %v1709_v37 = vpop.f32.mrb[14].mxu0  ;;  %v1780_v39 = vpop.f32.mrb[22].mxu1 }
 0x884   :  { %v3044_v44 = vadd.f32 %v3546_v6, %v1709_v37  ;;  %v1711_v59 = vpop.f32.mrb[15].mxu0  ;;  %v2443_v9 = vpop.f32.mrb[23].mxu1  ;;  %v1781_v19 = vadd.f32 %v1780_v39, %v3552_v36 }
 0x885   :  { %v3046_v8 = vadd.f32 %v3549_v21, %v1711_v59 }
 0x886   :  { %v1940_v48 = vmul.f32 -1.442695, %v3044_v44 }
 0x887   :  { %v1941_v11 = vmul.f32 -1.442695, %v3046_v8 }
 0x888   :  { %3145 = vpow2.f32 %v1940_v48 }
 0x889   :  { %3147 = vpow2.f32 %v1941_v11 }
 0x892   :  { %v3146_v12 = vpop.eup %3145 }
 0x893   :  { %v1788_v14 = vadd.f32 1.0, %v3146_v12  ;;  %v3148_v16 = vpop.eup %3147 }
 0x894   :  { %v1795_v17 = vadd.f32 1.0, %v3148_v16 }
 0x895   :  { %3149 = vrcp.f32 %v1788_v14 }
 0x89f   :  { %v3150_v40 = vpop.eup %3149 }
 0x8a0   :  { %v1798_v22 = vmul.f32 %v3150_v40, %v1781_v19 }
 0x8a2   :  { %v1799_v27 = vadd.f32 %v1798_v22, %v3542_v62 }
 0x8a4   :  { %3151 = vtanh.f32 %v1799_v27 }
 0x8a5   :  { %3153 = vrcp.f32 %v1795_v17 }
 0x8ae   :  { %v3152_v6 = vpop.eup %3151 }
 0x8af   :  { %v1801_v18 = vsub.f32 %v3788_v24, %v3152_v6  ;;  %v3154_v25 = vpop.eup %3153 }
 0x8b1   :  { %v1802_v21 = vmul.f32 %v3154_v25, %v1801_v18 }
 0x8b3   :  { %v1803_v26 = vadd.f32 %v3152_v6, %v1802_v21 }
 0x8b5   :  { %2477 = vmatmul.mubr.f32.vlgmr.msra.gmra.mrb[16].mxu0 %v1803_v26 }
 0x988   :  { %v1897_v36 = vpop.f32.mrb[16].mxu0 }
 0x989   :  { %v1898_v35 = vadd.f32 %v1942_v34, %v1897_v36  ;;  %v2478_v41 = vpop.f32.mrb[17].mxu0 }
 0x98b   :  { %1901 = vst [vmem:[#allocation12] sm:$0xff] %v1898_v35 }
 0x98c   :  { %3254 = shalt.err (!%p3251_p8)
}
 0x98d   :  { %s3255_s13 = scalar_lea.hbm %s3828_s7, 128 }
 0x98e   :  { %p3256_p9 = scmp.ne.s32.totalorder %s3828_s7, %s3255_s13  ;;  %p3259_p10 = scmp.lt.u32.totalorder %s3255_s13, %s3828_s7 }
 0x990   :  { %p3261_p11 = pnand %p3259_p10, %p3256_p9 }
 0x992   :  { %3264 = shalt.err (!%p3261_p11)
}
 0x993   :  { %1911 = dma.vmem_to_hbm [thread:$0]  %s1909_s30, 128, %s3828_s7, [#allocation6]  }
 0x994   :  { %3271 = dma.done.wait [#allocation6], 128  }
 0x995   :  { %3272 = vsyncadd [#allocation6], 4294967168 }
 0x996   :  { %1915 = vsyncpa [#allocation5], 1 }
 0x997   :  { %1916 = vsyncpa [#allocation8], 1 }
 0x998   :  { %1917 = vsyncpa [#allocation11], 1 }
 0x999   :  { %1918 = vsyncpa [#allocation6], 1 }

</bundles_post_ra>
